<compile_context>
chip_gen: v7x
topology: tpu7x:2x2x1
jax: 0.10.0
libtpu: 0.0.40
codegen_flags: <defaults>
</compile_context>

<pallas_src>
import functools
import math

import jax
import jax.numpy as jnp
from jax import lax
from jax.experimental import pallas as pl
from jax.experimental.pallas import tpu as pltpu


LATENT_DIM = 32
IMG_SHAPE = (1, 8, 8)          # (C, H, W), so the final Linear is 1024 -> 64
HIDDEN = (128, 256, 512, 1024)
BN_EPS = 0.8                   # nn.BatchNorm1d(out_feat, 0.8) -> eps = 0.8
LRELU_SLOPE = 0.2


def _leaky_relu(x):
    return jnp.where(x > 0, x, LRELU_SLOPE * x)


def _mm(x_f32, w_bf16, bias_f32):
    """bf16 x bf16 matmul on the MXU with f32 accumulation, + f32 bias."""
    return jnp.dot(x_f32.astype(jnp.bfloat16), w_bf16,
                   preferred_element_type=jnp.float32) + bias_f32


def _bn_lrelu(y, p_ref):
    """Training-mode BatchNorm1d (batch stats, biased var) + LeakyReLU.

    p_ref rows: 0 = (already-added) unused, 1 = gamma, 2 = beta.
    """
    mean = jnp.mean(y, axis=0, keepdims=True)
    yc = y - mean
    var = jnp.mean(yc * yc, axis=0, keepdims=True)      # biased batch variance
    y_hat = yc * lax.rsqrt(var + BN_EPS)
    return _leaky_relu(y_hat * p_ref[1:2, :] + p_ref[2:3, :])


def _generator_kernel(z_ref, w1_ref, b15_ref, w2_ref, p2_ref,
                      w3_hbm, p3_ref, w4_hbm, p4_ref, w5_hbm,
                      out_ref,
                      w3_buf, w4_buf, w5_buf, sem):
    # ---- kick off the tail-weight DMAs so they overlap layers 1-3 ----
    cp3 = pltpu.make_async_copy(w3_hbm, w3_buf, sem.at[0])
    cp4 = pltpu.make_async_copy(w4_hbm, w4_buf, sem.at[1])
    cp5 = pltpu.make_async_copy(w5_hbm, w5_buf, sem.at[2])
    cp3.start()
    cp4.start()
    cp5.start()

    # ---- block 1: Linear + LeakyReLU (no BatchNorm) ----
    h = _leaky_relu(_mm(z_ref[...], w1_ref[...], b15_ref[0:1, :]))

    # ---- blocks 2..4: Linear + BatchNorm1d(batch stats, eps=0.8) + LeakyReLU ----
    h = _bn_lrelu(_mm(h, w2_ref[...], p2_ref[0:1, :]), p2_ref)

    cp3.wait()
    h = _bn_lrelu(_mm(h, w3_buf[...], p3_ref[0:1, :]), p3_ref)

    cp4.wait()
    h = _bn_lrelu(_mm(h, w4_buf[...], p4_ref[0:1, :]), p4_ref)

    # ---- final Linear (pre-padded to a lane-dense 128-wide output) + Tanh ----
    cp5.wait()
    out_ref[...] = jnp.tanh(_mm(h, w5_buf[...], b15_ref[1:2, :]))


def init_params(key, latent_dim=LATENT_DIM, img_shape=IMG_SHAPE):
    """Deterministic synthetic parameters (PyTorch-Linear-like uniform init).

    Weights are stored in bf16 (halves HBM weight traffic in this memory-bound
    kernel); biases and BatchNorm affine params stay in f32.  The final layer
    is padded to 128 output features here, one time, so the per-call forward
    does no padding work.  Small vectors are packed to reduce operand count:
      b15  : (2, 128)  row0 = bias of layer 1, row1 = bias of layer 5 (padded)
      packK: (3, N)    row0 = biasK, row1 = gammaK, row2 = betaK   (K = 2..4)
    """
    out_dim = int(math.prod(img_shape))
    padded_out = ((out_dim + 127) // 128) * 128
    dims = (latent_dim,) + HIDDEN + (out_dim,)

    ws, bs = [], []
    keys = jax.random.split(key, 2 * (len(dims) - 1))
    for i in range(len(dims) - 1):
        fan_in, fan_out = dims[i], dims[i + 1]
        bound = 1.0 / (fan_in ** 0.5)
        ws.append(jax.random.uniform(keys[2 * i], (fan_in, fan_out),
                                     jnp.float32, -bound, bound))
        bs.append(jax.random.uniform(keys[2 * i + 1], (fan_out,),
                                     jnp.float32, -bound, bound))

    # One-time lane-dense padding of the final layer (zero cols -> tanh(0)=0,
    # sliced away by the wrapper).
    w5 = jnp.pad(ws[4], ((0, 0), (0, padded_out - out_dim)))
    b5 = jnp.pad(bs[4], ((0, padded_out - out_dim),))

    weights = tuple(w.astype(jnp.bfloat16) for w in (ws[0], ws[1], ws[2], ws[3], w5))

    b15 = jnp.stack([bs[0], b5], axis=0)                       # (2, 128) f32
    packs = []
    for b_vec, feat in zip(bs[1:4], HIDDEN[1:]):
        packs.append(jnp.stack([b_vec,
                                jnp.ones((feat,), jnp.float32),    # gamma init
                                jnp.zeros((feat,), jnp.float32)],  # beta init
                               axis=0))                            # (3, N) f32
    return {"w": weights, "b15": b15, "packs": tuple(packs)}


@functools.partial(jax.jit, static_argnames=("img_shape",))
def generator_forward(z, params, img_shape=IMG_SHAPE):
    w1, w2, w3, w4, w5p = params["w"]
    b15 = params["b15"]
    p2, p3, p4 = params["packs"]

    batch = z.shape[0]
    out_dim = int(math.prod(img_shape))
    padded_out = w5p.shape[1]

    vmem = pl.BlockSpec(memory_space=pltpu.MemorySpace.VMEM)
    hbm = pl.BlockSpec(memory_space=pl.ANY)    # tail weights: manual prefetch

    inputs = (z, w1, b15, w2, p2, w3, p3, w4, p4, w5p)
    in_specs = [vmem, vmem, vmem, vmem, vmem, hbm, vmem, hbm, vmem, hbm]

    # Scoped-VMEM budget: operands (+ scratch copies of the HBM weights),
    # output, and activation temporaries, with headroom.  Well below v7x's
    # 64 MiB physical VMEM at small batch.
    in_bytes = sum(int(a.size) * a.dtype.itemsize for a in inputs)
    out_bytes = batch * padded_out * 4
    act_bytes = 8 * batch * max(HIDDEN) * 4
    vmem_limit = int(2 * (in_bytes + out_bytes) + act_bytes + (4 << 20))

    flops = 2 * batch * sum(int(w.shape[0]) * int(w.shape[1]) for w in params["w"])
    transcendentals = batch * padded_out + sum(HIDDEN[1:])      # tanh + rsqrt

    flat = pl.pallas_call(
        _generator_kernel,
        out_shape=jax.ShapeDtypeStruct((batch, padded_out), jnp.float32),
        in_specs=in_specs,
        out_specs=vmem,
        scratch_shapes=[
            pltpu.VMEM((HIDDEN[1], HIDDEN[2]), jnp.bfloat16),   # w3 buffer
            pltpu.VMEM((HIDDEN[2], HIDDEN[3]), jnp.bfloat16),   # w4 buffer
            pltpu.VMEM((HIDDEN[3], padded_out), jnp.bfloat16),  # w5 buffer
            pltpu.SemaphoreType.DMA((3,)),
        ],
        compiler_params=pltpu.CompilerParams(vmem_limit_bytes=vmem_limit),
        cost_estimate=pl.CostEstimate(flops=flops,
                                      transcendentals=transcendentals,
                                      bytes_accessed=in_bytes + out_bytes),
    )(*inputs)

    return flat[:, :out_dim].reshape((batch,) + tuple(img_shape))


def _reference_forward(z, params, img_shape=IMG_SHAPE):
    """Plain-JAX reference using the same bf16 weights / f32 accumulation."""
    w1, w2, w3, w4, w5p = params["w"]
    b15 = params["b15"]
    p2, p3, p4 = params["packs"]
    out_dim = int(math.prod(img_shape))

    def mm(x, w, b):
        return jnp.dot(x.astype(jnp.bfloat16), w,
                       preferred_element_type=jnp.float32) + b

    def lrelu(x):
        return jnp.where(x > 0, x, LRELU_SLOPE * x)

    def bn_block(x, w, p):
        y = mm(x, w, p[0])
        m = jnp.mean(y, axis=0, keepdims=True)
        yc = y - m
        v = jnp.mean(yc * yc, axis=0, keepdims=True)
        return lrelu(yc * lax.rsqrt(v + BN_EPS) * p[1] + p[2])

    h = lrelu(mm(z, w1, b15[0]))
    h = bn_block(h, w2, p2)
    h = bn_block(h, w3, p3)
    h = bn_block(h, w4, p4)
    o = jnp.tanh(mm(h, w5p, b15[1]))
    return o[:, :out_dim].reshape((z.shape[0],) + tuple(img_shape))


if __name__ == "__main__":
    key = jax.random.PRNGKey(0)
    k_param, k_z = jax.random.split(key)

    batch = 8
    z = jax.random.normal(k_z, (batch, LATENT_DIM), dtype=jnp.float32)
    params = init_params(k_param)

    img = jax.block_until_ready(generator_forward(z, params))
    ref = _reference_forward(z, params)

    assert img.shape == (batch,) + IMG_SHAPE
    # bf16 matmul inputs -> compare at bf16-appropriate tolerance (outputs are
    # tanh-bounded, so atol dominates).
    max_err = float(jnp.max(jnp.abs(img - ref)))
    assert jnp.allclose(img, ref, atol=2e-2, rtol=2e-2), max_err

    print("KERNEL_OK")
</pallas_src>

<mosaic_0001>
module attributes {stable_mosaic.version = 11 : i64} {
  func.func @_generator_kernel(%arg0: memref<8x32xf32, #tpu.memory_space<vmem>>, %arg1: memref<32x128xbf16, #tpu.memory_space<vmem>>, %arg2: memref<2x128xf32, #tpu.memory_space<vmem>>, %arg3: memref<128x256xbf16, #tpu.memory_space<vmem>>, %arg4: memref<3x256xf32, #tpu.memory_space<vmem>>, %arg5: memref<256x512xbf16, #tpu.memory_space<any>>, %arg6: memref<3x512xf32, #tpu.memory_space<vmem>>, %arg7: memref<512x1024xbf16, #tpu.memory_space<any>>, %arg8: memref<3x1024xf32, #tpu.memory_space<vmem>>, %arg9: memref<1024x128xbf16, #tpu.memory_space<any>>, %arg10: memref<8x128xf32, #tpu.memory_space<vmem>>, %arg11: memref<256x512xbf16, #tpu.memory_space<vmem>>, %arg12: memref<512x1024xbf16, #tpu.memory_space<vmem>>, %arg13: memref<1024x128xbf16, #tpu.memory_space<vmem>>, %arg14: memref<3x!tpu.dma_semaphore, #tpu.memory_space<semaphore_mem>>) attributes {dimension_semantics = [], scalar_prefetch = 0 : i64, scratch_operands = 4 : i64, tpu.core_type = #tpu.core_type<tc>} {
    %c0_i32 = arith.constant 0 : i32
    %0 = tpu.memref_slice %arg14[%c0_i32] : memref<3x!tpu.dma_semaphore, #tpu.memory_space<semaphore_mem>> -> memref<1x!tpu.dma_semaphore, #tpu.memory_space<semaphore_mem>>
    %1 = tpu.memref_squeeze %0 : memref<1x!tpu.dma_semaphore, #tpu.memory_space<semaphore_mem>> -> memref<!tpu.dma_semaphore, #tpu.memory_space<semaphore_mem>>
    tpu.enqueue_dma source(%arg5 : memref<256x512xbf16, #tpu.memory_space<any>>) target(%arg11 : memref<256x512xbf16, #tpu.memory_space<vmem>>) target_semaphore(%1 : memref<!tpu.dma_semaphore, #tpu.memory_space<semaphore_mem>>)
    %c1_i32 = arith.constant 1 : i32
    %2 = tpu.memref_slice %arg14[%c1_i32] : memref<3x!tpu.dma_semaphore, #tpu.memory_space<semaphore_mem>> -> memref<1x!tpu.dma_semaphore, #tpu.memory_space<semaphore_mem>>
    %3 = tpu.memref_squeeze %2 : memref<1x!tpu.dma_semaphore, #tpu.memory_space<semaphore_mem>> -> memref<!tpu.dma_semaphore, #tpu.memory_space<semaphore_mem>>
    tpu.enqueue_dma source(%arg7 : memref<512x1024xbf16, #tpu.memory_space<any>>) target(%arg12 : memref<512x1024xbf16, #tpu.memory_space<vmem>>) target_semaphore(%3 : memref<!tpu.dma_semaphore, #tpu.memory_space<semaphore_mem>>)
    %c2_i32 = arith.constant 2 : i32
    %4 = tpu.memref_slice %arg14[%c2_i32] : memref<3x!tpu.dma_semaphore, #tpu.memory_space<semaphore_mem>> -> memref<1x!tpu.dma_semaphore, #tpu.memory_space<semaphore_mem>>
    %5 = tpu.memref_squeeze %4 : memref<1x!tpu.dma_semaphore, #tpu.memory_space<semaphore_mem>> -> memref<!tpu.dma_semaphore, #tpu.memory_space<semaphore_mem>>
    tpu.enqueue_dma source(%arg9 : memref<1024x128xbf16, #tpu.memory_space<any>>) target(%arg13 : memref<1024x128xbf16, #tpu.memory_space<vmem>>) target_semaphore(%5 : memref<!tpu.dma_semaphore, #tpu.memory_space<semaphore_mem>>)
    %c0 = arith.constant 0 : index
    %c0_0 = arith.constant 0 : index
    %6 = vector.load %arg0[%c0, %c0_0] : memref<8x32xf32, #tpu.memory_space<vmem>>, vector<8x32xf32>
    %c0_1 = arith.constant 0 : index
    %c0_2 = arith.constant 0 : index
    %7 = vector.load %arg1[%c0_1, %c0_2] : memref<32x128xbf16, #tpu.memory_space<vmem>>, vector<32x128xbf16>
    %c0_3 = arith.constant 0 : index
    %c0_4 = arith.constant 0 : index
    %8 = vector.load %arg2[%c0_3, %c0_4] : memref<2x128xf32, #tpu.memory_space<vmem>>, vector<1x128xf32>
    %9 = arith.truncf %6 : vector<8x32xf32> to vector<8x32xbf16>
    %cst = arith.constant dense<0.000000e+00> : vector<8x128xf32>
    %10 = tpu.matmul %9, %7, %cst {dimension_numbers = #tpu.dot_dimension_numbers<[1], [0], [0], [1], [0, 0, 1, 1], [], []>} : vector<8x32xbf16>, vector<32x128xbf16>, vector<8x128xf32> -> vector<8x128xf32>
    %11 = vector.broadcast %8 : vector<1x128xf32> to vector<8x128xf32>
    %12 = arith.addf %10, %11 : vector<8x128xf32>
    %cst_5 = arith.constant 0.000000e+00 : f32
    %13 = vector.broadcast %cst_5 : f32 to vector<8x128xf32>
    %14 = arith.cmpf ogt, %12, %13 : vector<8x128xf32>
    %cst_6 = arith.constant 2.000000e-01 : f32
    %15 = vector.broadcast %cst_6 : f32 to vector<8x128xf32>
    %16 = arith.mulf %15, %12 : vector<8x128xf32>
    %17 = arith.select %14, %12, %16 : vector<8x128xi1>, vector<8x128xf32>
    %c0_7 = arith.constant 0 : index
    %c0_8 = arith.constant 0 : index
    %18 = vector.load %arg3[%c0_7, %c0_8] : memref<128x256xbf16, #tpu.memory_space<vmem>>, vector<128x256xbf16>
    %c0_9 = arith.constant 0 : index
    %c0_10 = arith.constant 0 : index
    %19 = vector.load %arg4[%c0_9, %c0_10] : memref<3x256xf32, #tpu.memory_space<vmem>>, vector<1x256xf32>
    %20 = arith.truncf %17 : vector<8x128xf32> to vector<8x128xbf16>
    %cst_11 = arith.constant dense<0.000000e+00> : vector<8x256xf32>
    %21 = tpu.matmul %20, %18, %cst_11 {dimension_numbers = #tpu.dot_dimension_numbers<[1], [0], [0], [1], [0, 0, 1, 1], [], []>} : vector<8x128xbf16>, vector<128x256xbf16>, vector<8x256xf32> -> vector<8x256xf32>
    %22 = vector.broadcast %19 : vector<1x256xf32> to vector<8x256xf32>
    %23 = arith.addf %21, %22 : vector<8x256xf32>
    %cst_12 = arith.constant dense<0.000000e+00> : vector<256xf32>
    %24 = vector.multi_reduction <add>, %23, %cst_12 [0] : vector<8x256xf32> to vector<256xf32>
    %25 = vector.shape_cast %24 : vector<256xf32> to vector<1x256xf32>
    %cst_13 = arith.constant 8.000000e+00 : f32
    %26 = vector.broadcast %cst_13 : f32 to vector<1x256xf32>
    %27 = arith.divf %25, %26 : vector<1x256xf32>
    %28 = vector.broadcast %27 : vector<1x256xf32> to vector<8x256xf32>
    %29 = arith.subf %23, %28 : vector<8x256xf32>
    %30 = arith.mulf %29, %29 : vector<8x256xf32>
    %cst_14 = arith.constant dense<0.000000e+00> : vector<256xf32>
    %31 = vector.multi_reduction <add>, %30, %cst_14 [0] : vector<8x256xf32> to vector<256xf32>
    %32 = vector.shape_cast %31 : vector<256xf32> to vector<1x256xf32>
    %cst_15 = arith.constant 8.000000e+00 : f32
    %33 = vector.broadcast %cst_15 : f32 to vector<1x256xf32>
    %34 = arith.divf %32, %33 : vector<1x256xf32>
    %cst_16 = arith.constant 8.000000e-01 : f32
    %35 = vector.broadcast %cst_16 : f32 to vector<1x256xf32>
    %36 = arith.addf %34, %35 : vector<1x256xf32>
    %37 = math.rsqrt %36 : vector<1x256xf32>
    %38 = vector.broadcast %37 : vector<1x256xf32> to vector<8x256xf32>
    %39 = arith.mulf %29, %38 : vector<8x256xf32>
    %c1 = arith.constant 1 : index
    %c0_17 = arith.constant 0 : index
    %40 = vector.load %arg4[%c1, %c0_17] : memref<3x256xf32, #tpu.memory_space<vmem>>, vector<1x256xf32>
    %41 = vector.broadcast %40 : vector<1x256xf32> to vector<8x256xf32>
    %42 = arith.mulf %39, %41 : vector<8x256xf32>
    %c2 = arith.constant 2 : index
    %c0_18 = arith.constant 0 : index
    %43 = vector.load %arg4[%c2, %c0_18] : memref<3x256xf32, #tpu.memory_space<vmem>>, vector<1x256xf32>
    %44 = vector.broadcast %43 : vector<1x256xf32> to vector<8x256xf32>
    %45 = arith.addf %42, %44 : vector<8x256xf32>
    %cst_19 = arith.constant 0.000000e+00 : f32
    %46 = vector.broadcast %cst_19 : f32 to vector<8x256xf32>
    %47 = arith.cmpf ogt, %45, %46 : vector<8x256xf32>
    %cst_20 = arith.constant 2.000000e-01 : f32
    %48 = vector.broadcast %cst_20 : f32 to vector<8x256xf32>
    %49 = arith.mulf %48, %45 : vector<8x256xf32>
    %50 = arith.select %47, %45, %49 : vector<8x256xi1>, vector<8x256xf32>
    %c0_i32_21 = arith.constant 0 : i32
    %51 = tpu.memref_slice %arg14[%c0_i32_21] : memref<3x!tpu.dma_semaphore, #tpu.memory_space<semaphore_mem>> -> memref<1x!tpu.dma_semaphore, #tpu.memory_space<semaphore_mem>>
    %52 = tpu.memref_squeeze %51 : memref<1x!tpu.dma_semaphore, #tpu.memory_space<semaphore_mem>> -> memref<!tpu.dma_semaphore, #tpu.memory_space<semaphore_mem>>
    tpu.wait_dma2 semaphore(%52 : memref<!tpu.dma_semaphore, #tpu.memory_space<semaphore_mem>>) src(%arg5 : memref<256x512xbf16, #tpu.memory_space<any>>) dst(%arg11 : memref<256x512xbf16, #tpu.memory_space<vmem>>)
    %c0_22 = arith.constant 0 : index
    %c0_23 = arith.constant 0 : index
    %53 = vector.load %arg11[%c0_22, %c0_23] : memref<256x512xbf16, #tpu.memory_space<vmem>>, vector<256x512xbf16>
    %c0_24 = arith.constant 0 : index
    %c0_25 = arith.constant 0 : index
    %54 = vector.load %arg6[%c0_24, %c0_25] : memref<3x512xf32, #tpu.memory_space<vmem>>, vector<1x512xf32>
    %55 = arith.truncf %50 : vector<8x256xf32> to vector<8x256xbf16>
    %cst_26 = arith.constant dense<0.000000e+00> : vector<8x512xf32>
    %56 = tpu.matmul %55, %53, %cst_26 {dimension_numbers = #tpu.dot_dimension_numbers<[1], [0], [0], [1], [0, 0, 1, 1], [], []>} : vector<8x256xbf16>, vector<256x512xbf16>, vector<8x512xf32> -> vector<8x512xf32>
    %57 = vector.broadcast %54 : vector<1x512xf32> to vector<8x512xf32>
    %58 = arith.addf %56, %57 : vector<8x512xf32>
    %cst_27 = arith.constant dense<0.000000e+00> : vector<512xf32>
    %59 = vector.multi_reduction <add>, %58, %cst_27 [0] : vector<8x512xf32> to vector<512xf32>
    %60 = vector.shape_cast %59 : vector<512xf32> to vector<1x512xf32>
    %cst_28 = arith.constant 8.000000e+00 : f32
    %61 = vector.broadcast %cst_28 : f32 to vector<1x512xf32>
    %62 = arith.divf %60, %61 : vector<1x512xf32>
    %63 = vector.broadcast %62 : vector<1x512xf32> to vector<8x512xf32>
    %64 = arith.subf %58, %63 : vector<8x512xf32>
    %65 = arith.mulf %64, %64 : vector<8x512xf32>
    %cst_29 = arith.constant dense<0.000000e+00> : vector<512xf32>
    %66 = vector.multi_reduction <add>, %65, %cst_29 [0] : vector<8x512xf32> to vector<512xf32>
    %67 = vector.shape_cast %66 : vector<512xf32> to vector<1x512xf32>
    %cst_30 = arith.constant 8.000000e+00 : f32
    %68 = vector.broadcast %cst_30 : f32 to vector<1x512xf32>
    %69 = arith.divf %67, %68 : vector<1x512xf32>
    %cst_31 = arith.constant 8.000000e-01 : f32
    %70 = vector.broadcast %cst_31 : f32 to vector<1x512xf32>
    %71 = arith.addf %69, %70 : vector<1x512xf32>
    %72 = math.rsqrt %71 : vector<1x512xf32>
    %73 = vector.broadcast %72 : vector<1x512xf32> to vector<8x512xf32>
    %74 = arith.mulf %64, %73 : vector<8x512xf32>
    %c1_32 = arith.constant 1 : index
    %c0_33 = arith.constant 0 : index
    %75 = vector.load %arg6[%c1_32, %c0_33] : memref<3x512xf32, #tpu.memory_space<vmem>>, vector<1x512xf32>
    %76 = vector.broadcast %75 : vector<1x512xf32> to vector<8x512xf32>
    %77 = arith.mulf %74, %76 : vector<8x512xf32>
    %c2_34 = arith.constant 2 : index
    %c0_35 = arith.constant 0 : index
    %78 = vector.load %arg6[%c2_34, %c0_35] : memref<3x512xf32, #tpu.memory_space<vmem>>, vector<1x512xf32>
    %79 = vector.broadcast %78 : vector<1x512xf32> to vector<8x512xf32>
    %80 = arith.addf %77, %79 : vector<8x512xf32>
    %cst_36 = arith.constant 0.000000e+00 : f32
    %81 = vector.broadcast %cst_36 : f32 to vector<8x512xf32>
    %82 = arith.cmpf ogt, %80, %81 : vector<8x512xf32>
    %cst_37 = arith.constant 2.000000e-01 : f32
    %83 = vector.broadcast %cst_37 : f32 to vector<8x512xf32>
    %84 = arith.mulf %83, %80 : vector<8x512xf32>
    %85 = arith.select %82, %80, %84 : vector<8x512xi1>, vector<8x512xf32>
    %c1_i32_38 = arith.constant 1 : i32
    %86 = tpu.memref_slice %arg14[%c1_i32_38] : memref<3x!tpu.dma_semaphore, #tpu.memory_space<semaphore_mem>> -> memref<1x!tpu.dma_semaphore, #tpu.memory_space<semaphore_mem>>
    %87 = tpu.memref_squeeze %86 : memref<1x!tpu.dma_semaphore, #tpu.memory_space<semaphore_mem>> -> memref<!tpu.dma_semaphore, #tpu.memory_space<semaphore_mem>>
    tpu.wait_dma2 semaphore(%87 : memref<!tpu.dma_semaphore, #tpu.memory_space<semaphore_mem>>) src(%arg7 : memref<512x1024xbf16, #tpu.memory_space<any>>) dst(%arg12 : memref<512x1024xbf16, #tpu.memory_space<vmem>>)
    %c0_39 = arith.constant 0 : index
    %c0_40 = arith.constant 0 : index
    %88 = vector.load %arg12[%c0_39, %c0_40] : memref<512x1024xbf16, #tpu.memory_space<vmem>>, vector<512x1024xbf16>
    %c0_41 = arith.constant 0 : index
    %c0_42 = arith.constant 0 : index
    %89 = vector.load %arg8[%c0_41, %c0_42] : memref<3x1024xf32, #tpu.memory_space<vmem>>, vector<1x1024xf32>
    %90 = arith.truncf %85 : vector<8x512xf32> to vector<8x512xbf16>
    %cst_43 = arith.constant dense<0.000000e+00> : vector<8x1024xf32>
    %91 = tpu.matmul %90, %88, %cst_43 {dimension_numbers = #tpu.dot_dimension_numbers<[1], [0], [0], [1], [0, 0, 1, 1], [], []>} : vector<8x512xbf16>, vector<512x1024xbf16>, vector<8x1024xf32> -> vector<8x1024xf32>
    %92 = vector.broadcast %89 : vector<1x1024xf32> to vector<8x1024xf32>
    %93 = arith.addf %91, %92 : vector<8x1024xf32>
    %cst_44 = arith.constant dense<0.000000e+00> : vector<1024xf32>
    %94 = vector.multi_reduction <add>, %93, %cst_44 [0] : vector<8x1024xf32> to vector<1024xf32>
    %95 = vector.shape_cast %94 : vector<1024xf32> to vector<1x1024xf32>
    %cst_45 = arith.constant 8.000000e+00 : f32
    %96 = vector.broadcast %cst_45 : f32 to vector<1x1024xf32>
    %97 = arith.divf %95, %96 : vector<1x1024xf32>
    %98 = vector.broadcast %97 : vector<1x1024xf32> to vector<8x1024xf32>
    %99 = arith.subf %93, %98 : vector<8x1024xf32>
    %100 = arith.mulf %99, %99 : vector<8x1024xf32>
    %cst_46 = arith.constant dense<0.000000e+00> : vector<1024xf32>
    %101 = vector.multi_reduction <add>, %100, %cst_46 [0] : vector<8x1024xf32> to vector<1024xf32>
    %102 = vector.shape_cast %101 : vector<1024xf32> to vector<1x1024xf32>
    %cst_47 = arith.constant 8.000000e+00 : f32
    %103 = vector.broadcast %cst_47 : f32 to vector<1x1024xf32>
    %104 = arith.divf %102, %103 : vector<1x1024xf32>
    %cst_48 = arith.constant 8.000000e-01 : f32
    %105 = vector.broadcast %cst_48 : f32 to vector<1x1024xf32>
    %106 = arith.addf %104, %105 : vector<1x1024xf32>
    %107 = math.rsqrt %106 : vector<1x1024xf32>
    %108 = vector.broadcast %107 : vector<1x1024xf32> to vector<8x1024xf32>
    %109 = arith.mulf %99, %108 : vector<8x1024xf32>
    %c1_49 = arith.constant 1 : index
    %c0_50 = arith.constant 0 : index
    %110 = vector.load %arg8[%c1_49, %c0_50] : memref<3x1024xf32, #tpu.memory_space<vmem>>, vector<1x1024xf32>
    %111 = vector.broadcast %110 : vector<1x1024xf32> to vector<8x1024xf32>
    %112 = arith.mulf %109, %111 : vector<8x1024xf32>
    %c2_51 = arith.constant 2 : index
    %c0_52 = arith.constant 0 : index
    %113 = vector.load %arg8[%c2_51, %c0_52] : memref<3x1024xf32, #tpu.memory_space<vmem>>, vector<1x1024xf32>
    %114 = vector.broadcast %113 : vector<1x1024xf32> to vector<8x1024xf32>
    %115 = arith.addf %112, %114 : vector<8x1024xf32>
    %cst_53 = arith.constant 0.000000e+00 : f32
    %116 = vector.broadcast %cst_53 : f32 to vector<8x1024xf32>
    %117 = arith.cmpf ogt, %115, %116 : vector<8x1024xf32>
    %cst_54 = arith.constant 2.000000e-01 : f32
    %118 = vector.broadcast %cst_54 : f32 to vector<8x1024xf32>
    %119 = arith.mulf %118, %115 : vector<8x1024xf32>
    %120 = arith.select %117, %115, %119 : vector<8x1024xi1>, vector<8x1024xf32>
    %c2_i32_55 = arith.constant 2 : i32
    %121 = tpu.memref_slice %arg14[%c2_i32_55] : memref<3x!tpu.dma_semaphore, #tpu.memory_space<semaphore_mem>> -> memref<1x!tpu.dma_semaphore, #tpu.memory_space<semaphore_mem>>
    %122 = tpu.memref_squeeze %121 : memref<1x!tpu.dma_semaphore, #tpu.memory_space<semaphore_mem>> -> memref<!tpu.dma_semaphore, #tpu.memory_space<semaphore_mem>>
    tpu.wait_dma2 semaphore(%122 : memref<!tpu.dma_semaphore, #tpu.memory_space<semaphore_mem>>) src(%arg9 : memref<1024x128xbf16, #tpu.memory_space<any>>) dst(%arg13 : memref<1024x128xbf16, #tpu.memory_space<vmem>>)
    %c0_56 = arith.constant 0 : index
    %c0_57 = arith.constant 0 : index
    %123 = vector.load %arg13[%c0_56, %c0_57] : memref<1024x128xbf16, #tpu.memory_space<vmem>>, vector<1024x128xbf16>
    %c1_58 = arith.constant 1 : index
    %c0_59 = arith.constant 0 : index
    %124 = vector.load %arg2[%c1_58, %c0_59] : memref<2x128xf32, #tpu.memory_space<vmem>>, vector<1x128xf32>
    %125 = arith.truncf %120 : vector<8x1024xf32> to vector<8x1024xbf16>
    %cst_60 = arith.constant dense<0.000000e+00> : vector<8x128xf32>
    %126 = tpu.matmul %125, %123, %cst_60 {dimension_numbers = #tpu.dot_dimension_numbers<[1], [0], [0], [1], [0, 0, 1, 1], [], []>} : vector<8x1024xbf16>, vector<1024x128xbf16>, vector<8x128xf32> -> vector<8x128xf32>
    %127 = vector.broadcast %124 : vector<1x128xf32> to vector<8x128xf32>
    %128 = arith.addf %126, %127 : vector<8x128xf32>
    %129 = math.tanh %128 : vector<8x128xf32>
    %c0_61 = arith.constant 0 : index
    %c0_62 = arith.constant 0 : index
    %130 = vector.load %arg10[%c0_61, %c0_62] : memref<8x128xf32, #tpu.memory_space<vmem>>, vector<8x128xf32>
    tpu.vector_store %arg10[%c0_61, %c0_62], %129 {strides = array<i32>} : memref<8x128xf32, #tpu.memory_space<vmem>>, vector<8x128xf32>,
    return
  }
}

</mosaic_0001>

<bundles_post_ra>
// kernel: generator_forward.1
= control target key start
LH: loop header
LB: loop body
LE: loop exit
PB: predicated region body
PF: predicated region fallthrough
CT: control target
= control target key end

     0   :  { %15 = vsyncpa [#allocation7], 0  ;;  %s2686_s0 = inlined_call_operand.hbm [shape: f32[8,32], index: 0, kind: input, shape index: {}]   ;;  %s2687_s1 = inlined_call_operand.vmem [shape: bf16[32,128], index: 1, kind: input, shape index: {}]   ;;  %s2688_s2 = inlined_call_operand.vmem [shape: f32[2,128], index: 2, kind: input, shape index: {}]   ;;  %s2689_s3 = inlined_call_operand.hbm [shape: bf16[128,256], index: 3, kind: input, shape index: {}]   ;;  %s2690_s4 = inlined_call_operand.hbm [shape: f32[3,256], index: 4, kind: input, shape index: {}]   ;;  %s2691_s5 = inlined_call_operand.hbm [shape: bf16[256,512], index: 5, kind: input, shape index: {}]   ;;  %s2692_s6 = inlined_call_operand.hbm [shape: f32[3,512], index: 6, kind: input, shape index: {}]   ;;  %s2693_s7 = inlined_call_operand.hbm [shape: bf16[512,1024], index: 7, kind: input, shape index: {}]   ;;  %s2694_s8 = inlined_call_operand.hbm [shape: f32[3,1024], index: 8, kind: input, shape index: {}]   ;;  %s2695_s9 = inlined_call_operand.hbm [shape: bf16[1024,128], index: 9, kind: input, shape index: {}]   ;;  %s2696_s10 = inlined_call_operand.vmem [shape: f32[8,128], index: 10, kind: output, shape index: {}]  }
   0x1   :  { %16 = vsyncpa [#allocation9], 0 }
   0x2   :  { %17 = vsyncpa [#allocation12], 0  ;;  %s2339_s13 = smov [#allocation8]   ;;  %s2195_s17 = scalar_lea.hbm %s2689_s3, 2048 }
   0x3   :  { %s37_s14 = sshll.u32 %s2339_s13, 4  ;;  %p2196_p0 = scmp.ne.s32.totalorder %s2689_s3, %s2195_s17  ;;  %s38_s14 = int_to_ptr.vmem [resolvable:$true] %s37_s14 }
   0x4   :  { %p2199_p1 = scmp.lt.u32.totalorder %s2195_s17, %s2689_s3 }
   0x6   :  { %p2201_p2 = pnand %p2199_p1, %p2196_p0 }
   0x8   :  { %2204 = shalt.err (!%p2201_p2)
}
   0x9   :  { %s2205_s22 = scalar_lea.vmem %s38_s14, 2048  ;;  %p2210_p4 = scmp.lt.s32.totalorder %s38_s14, %s38_s14 }
   0xa   :  { %p2206_p3 = scmp.ne.s32.totalorder %s38_s14, %s2205_s22  ;;  %p2211_p5 = scmp.lt.s32.totalorder %s2205_s22, %s2205_s22 }
   0xc   :  { %p2212_p6 = por %p2211_p5, %p2210_p4 }
   0xe   :  { %p2213_p7 = pnand %p2212_p6, %p2206_p3 }
  0x10   :  { %2216 = shalt.err (!%p2213_p7)
}
  0x11   :  { %s2340_s23 = smov 128   ;;  %s2341_s24 = smov 8  }
  0x12   :  { %43 = dma.hbm_to_vmem [thread:$0]  %s2689_s3, 2048, %s38_s14, [#allocation9], %s2340_s23, %s2340_s23, %s2341_s24  }
  0x13   :  { %s2342_s27 = smov [#allocation11]   ;;  %s2343_s29 = smov [#allocation6]  }
  0x14   :  { %s60_s28 = sshll.u32 %s2342_s27, 4  ;;  %s24_s30 = sshll.u32 %s2343_s29, 4  ;;  %s61_s28 = int_to_ptr.vmem [resolvable:$true] %s60_s28  ;;  %s25_s30 = int_to_ptr.vmem [resolvable:$true] %s24_s30 }
  0x15   :  { %s2217_s13 = scalar_lea.hbm %s2692_s6, 256 }
  0x16   :  { %p2218_p8 = scmp.ne.s32.totalorder %s2692_s6, %s2217_s13  ;;  %p2221_p9 = scmp.lt.u32.totalorder %s2217_s13, %s2692_s6 }
  0x18   :  { %p2223_p10 = pnand %p2221_p9, %p2218_p8 }
  0x1a   :  { %2226 = shalt.err (!%p2223_p10)
}
  0x1b   :  { %s2227_s3 = scalar_lea.vmem %s61_s28, 256  ;;  %p2232_p12 = scmp.lt.s32.totalorder %s61_s28, %s61_s28 }
  0x1c   :  { %p2228_p11 = scmp.ne.s32.totalorder %s61_s28, %s2227_s3  ;;  %p2233_p13 = scmp.lt.s32.totalorder %s2227_s3, %s2227_s3 }
  0x1e   :  { %p2234_p0 = por %p2233_p13, %p2232_p12 }
  0x20   :  { %p2235_p1 = pnand %p2234_p0, %p2228_p11 }
  0x22   :  { %2238 = shalt.err (!%p2235_p1)
}
  0x23   :  { %63 = dma.hbm_to_vmem [thread:$0]  %s2692_s6, 256, %s61_s28, [#allocation12]  }
  0x24   :  { %s2239_s22 = scalar_lea.hbm %s2686_s0, 128 }
  0x25   :  { %p2240_p2 = scmp.ne.s32.totalorder %s2686_s0, %s2239_s22  ;;  %p2243_p3 = scmp.lt.u32.totalorder %s2239_s22, %s2686_s0 }
  0x27   :  { %p2245_p4 = pnand %p2243_p3, %p2240_p2 }
  0x29   :  { %2248 = shalt.err (!%p2245_p4)
}
  0x2a   :  { %s2249_s11 = scalar_lea.vmem %s25_s30, 128  ;;  %p2254_p6 = scmp.lt.s32.totalorder %s25_s30, %s25_s30 }
  0x2b   :  { %p2250_p5 = scmp.ne.s32.totalorder %s25_s30, %s2249_s11  ;;  %p2255_p7 = scmp.lt.s32.totalorder %s2249_s11, %s2249_s11 }
  0x2d   :  { %p2256_p8 = por %p2255_p7, %p2254_p6 }
  0x2f   :  { %p2257_p9 = pnand %p2256_p8, %p2250_p5 }
  0x31   :  { %2260 = shalt.err (!%p2257_p9)
}
  0x32   :  { %27 = dma.hbm_to_vmem [thread:$0]  %s2686_s0, 128, %s25_s30, [#allocation7]  }
  0x33   :  { %s2344_s12 = smov [#allocation10]   ;;  %s2345_s15 = smov [#allocation13]  }
  0x34   :  { %s50_s13 = sshll.u32 %s2344_s12, 4  ;;  %s70_s16 = sshll.u32 %s2345_s15, 4  ;;  %s51_s13 = int_to_ptr.vmem [resolvable:$true] %s50_s13  ;;  %s71_s16 = int_to_ptr.vmem [resolvable:$true] %s70_s16 }
  0x35   :  { %s2261_s3 = scalar_lea.hbm %s2690_s4, 128 }
  0x36   :  { %p2262_p10 = scmp.ne.s32.totalorder %s2690_s4, %s2261_s3  ;;  %p2265_p11 = scmp.lt.u32.totalorder %s2261_s3, %s2690_s4 }
  0x38   :  { %p2267_p12 = pnand %p2265_p11, %p2262_p10 }
  0x3a   :  { %2270 = shalt.err (!%p2267_p12)
}
  0x3b   :  { %s2271_s0 = scalar_lea.vmem %s51_s13, 128  ;;  %p2276_p0 = scmp.lt.s32.totalorder %s51_s13, %s51_s13 }
  0x3c   :  { %p2272_p13 = scmp.ne.s32.totalorder %s51_s13, %s2271_s0  ;;  %p2277_p1 = scmp.lt.s32.totalorder %s2271_s0, %s2271_s0 }
  0x3e   :  { %p2278_p2 = por %p2277_p1, %p2276_p0 }
  0x40   :  { %p2279_p3 = pnand %p2278_p2, %p2272_p13 }
  0x42   :  { %2282 = shalt.err (!%p2279_p3)
}
  0x43   :  { %53 = dma.hbm_to_vmem [thread:$0]  %s2690_s4, 128, %s51_s13, [#allocation9]  }
  0x44   :  { %s2283_s27 = scalar_lea.hbm %s2694_s8, 512 }
  0x45   :  { %p2284_p4 = scmp.ne.s32.totalorder %s2694_s8, %s2283_s27  ;;  %p2287_p5 = scmp.lt.u32.totalorder %s2283_s27, %s2694_s8 }
  0x47   :  { %p2289_p6 = pnand %p2287_p5, %p2284_p4 }
  0x49   :  { %2292 = shalt.err (!%p2289_p6)
}
  0x4a   :  { %s2293_s12 = scalar_lea.vmem %s71_s16, 512  ;;  %p2298_p8 = scmp.lt.s32.totalorder %s71_s16, %s71_s16 }
  0x4b   :  { %p2294_p7 = scmp.ne.s32.totalorder %s71_s16, %s2293_s12  ;;  %p2299_p9 = scmp.lt.s32.totalorder %s2293_s12, %s2293_s12 }
  0x4d   :  { %p2300_p10 = por %p2299_p9, %p2298_p8 }
  0x4f   :  { %p2301_p11 = pnand %p2300_p10, %p2294_p7 }
  0x51   :  { %2304 = shalt.err (!%p2301_p11)
}
  0x52   :  { %73 = dma.hbm_to_vmem [thread:$0]  %s2694_s8, 512, %s71_s16, [#allocation12]  }
  0x53   :  { %2327 = dma.done.wait [#allocation7], 128  }
  0x54   :  { %2328 = vsyncadd [#allocation7], 4294967168 }
  0x55   :  { %2329 = dma.done.wait [#allocation9], 2176  }
  0x56   :  { %2330 = vsyncadd [#allocation9], 4294965120 }
  0x57   :  { %2331 = dma.done.wait [#allocation12], 768  }
  0x58   :  { %2332 = vsyncadd [#allocation12], 4294966528  ;;  %s94_s15 = sld [smem:[#allocation0]]   ;;  %114 = sst [smem:[#allocation15 + $0x4]] %s2340_s23  ;;  %v2346_v0 = vmov 0.0   ;;  %vm2347_vm0 = vmmov 0  }
  0x59   :  { %2084 = vmatprep.subr.bf16.mxu0 %v2346_v0  ;;  %2088 = vmatprep.mubr.msk.bf16.mxu0 %vm2347_vm0, %v2346_v0  ;;  %s2348_s17 = smov 256   ;;  %s2349_s18 = smov [#allocation2]   ;;  %vm195_vm1 = vcmask 261120   ;;  %v2360_v21 = vmov 0  }
  0x5a   :  { %118 = sst [smem:[#allocation15 + $0x6]] %s2348_s17  ;;  %s102_s3 = sshll.u32 %s2349_s18, 4  ;;  %383 = vmatprep.mubr.bf16.mxu1 %v2360_v21  ;;  %s103_s3 = int_to_ptr.vmem [resolvable:$true] %s102_s3 }
  0x5b   :  { %s2350_s14 = smov 512   ;;  %s2351_s8 = smov 4  }
  0x5c   :  { %106 = sst [smem:[#allocation15]] %s2350_s14  ;;  %s2352_s19 = smov 64  }
  0x5d   :  { %108 = sst [smem:[#allocation15 + $0x1]] %s2350_s14  ;;  %s2353_s21 = smov 2  }
  0x5e   :  { %110 = sst [smem:[#allocation15 + $0x2]] %s2351_s8  ;;  %s1965_s16 = sshll.u32 %s94_s15, 26 }
  0x5f   :  { %112 = sst [smem:[#allocation15 + $0x3]] %s2352_s19  ;;  %s1966_s20 = sadd.s32 134217728, %s1965_s16 }
  0x60   :  { %116 = sst [smem:[#allocation15 + $0x5]] %s2353_s21  ;;  %s2354_s0 = smov [#allocation5]  }
  0x61   :  { %120 = sst [smem:[#allocation15 + $0x7]] %s2352_s19  ;;  %s2355_s30 = smov [#allocation14]  }
  0x62   :  { %122 = sst [smem:[#allocation15 + $0x8]] %s2351_s8  ;;  %s2356_s26 = smov 1024  }
  0x63   :  { %124 = dma.general %s2691_s5, 8192, %s103_s3, %s2354_s0, %s2355_s30, [#allocation15], %s1966_s20, 0  }
  0x64   :  { %145 = sst [smem:[#allocation17 + $0x2]] %s2341_s24  ;;  %s2357_s27 = smov [#allocation3]  }
  0x65   :  { %141 = sst [smem:[#allocation17]] %s2356_s26  ;;  %s137_s29 = sshll.u32 %s2357_s27, 4  ;;  %s138_s29 = int_to_ptr.vmem [resolvable:$true] %s137_s29 }
  0x66   :  { %143 = sst [smem:[#allocation17 + $0x1]] %s2356_s26  ;;  %s2358_s11 = smov [#allocation5 + $0x1]  }
  0x67   :  { %147 = sst [smem:[#allocation17 + $0x3]] %s2352_s19  ;;  %s2359_s6 = smov [#allocation16]  }
  0x68   :  { %149 = sst [smem:[#allocation17 + $0x4]] %s2340_s23  ;;  %s2361_s23 = smov [#allocation4]  }
  0x69   :  { %151 = sst [smem:[#allocation17 + $0x5]] %s2353_s21  ;;  %s168_s15 = sshll.u32 %s2361_s23, 4  ;;  %s169_s15 = int_to_ptr.vmem [resolvable:$true] %s168_s15 }
  0x6a   :  { %153 = sst [smem:[#allocation17 + $0x6]] %s2350_s14  ;;  %s2305_s3 = scalar_lea.hbm %s2695_s9, 8192 }
  0x6b   :  { %155 = sst [smem:[#allocation17 + $0x7]] %s2352_s19  ;;  %p2306_p12 = scmp.ne.s32.totalorder %s2695_s9, %s2305_s3 }
  0x6c   :  { %157 = sst [smem:[#allocation17 + $0x8]] %s2351_s8  ;;  %p2309_p13 = scmp.lt.u32.totalorder %s2305_s3, %s2695_s9 }
  0x6d   :  { %159 = dma.general %s2693_s7, 32768, %s138_s29, %s2358_s11, %s2359_s6, [#allocation17], %s1966_s20, 0  }
  0x6e   :  { %v2139_v1 = vld [vmem:[%s2687_s1] sm:$0xff]   ;;  %v2140_v2 = vld [vmem:[%s2687_s1 + $0x8] sm:$0xff]   ;;  %v172_v3 = vld [vmem:[#allocation6] sm:$0xff]  ;;  %p2311_p0 = pnand %p2309_p13, %p2306_p12 }
  0x6f   :  { %2085 = vmatpush3.bf16.msra.mxu0 %v2139_v1  ;;  %v2141_v4 = vld [vmem:[#allocation8 + $0x4] ss:$8 sps:$4 sm:$0xff]   ;;  %v2143_v5 = vld [vmem:[#allocation8] ss:$8 sps:$4 sm:$0xff]   ;;  %v2144_v6 = vld [vmem:[#allocation8 + $0x14] ss:$8 sps:$4 sm:$0xff]   ;;  %v178_v7 = vpack.c.bf16 %v172_v3, %v172_v3 }
  0x70   :  { %2086 = vmatprep.subr.bf16.mxu0 %v2346_v0  ;;  %351 = vmatprep.subr.bf16.mxu1 %v2141_v4  ;;  %v2146_v8 = vld [vmem:[#allocation8 + $0x10] ss:$8 sps:$4 sm:$0xff]   ;;  %v2147_v9 = vld [vmem:[#allocation8 + $0x24] ss:$8 sps:$4 sm:$0xff]   ;;  %v2149_v10 = vld [vmem:[#allocation8 + $0x20] ss:$8 sps:$4 sm:$0xff]  }
  0x71   :  { %352 = vmatpush1.bf16.msra.mxu1 %v2143_v5  ;;  %v2150_v11 = vld [vmem:[#allocation8 + $0x34] ss:$8 sps:$4 sm:$0xff]   ;;  %v2152_v12 = vld [vmem:[#allocation8 + $0x30] ss:$8 sps:$4 sm:$0xff]   ;;  %v2153_v13 = vld [vmem:[#allocation8 + $0x44] ss:$8 sps:$4 sm:$0xff]  }
  0x72   :  { %353 = vmatprep.subr.bf16.mxu1 %v2144_v6  ;;  %v2155_v14 = vld [vmem:[#allocation8 + $0x40] ss:$8 sps:$4 sm:$0xff]   ;;  %v2156_v15 = vld [vmem:[#allocation8 + $0x54] ss:$8 sps:$4 sm:$0xff]   ;;  %v2158_v16 = vld [vmem:[#allocation8 + $0x50] ss:$8 sps:$4 sm:$0xff]  }
  0x73   :  { %2087 = vmatpush3.bf16.msra.mxu0 %v2140_v2  ;;  %v2159_v17 = vld [vmem:[#allocation8 + $0x64] ss:$8 sps:$4 sm:$0xff]   ;;  %v2161_v18 = vld [vmem:[#allocation8 + $0x60] ss:$8 sps:$4 sm:$0xff]   ;;  %v2162_v19 = vld [vmem:[#allocation8 + $0x74] ss:$8 sps:$4 sm:$0xff]  }
  0x74   :  { %v2164_v20 = vld [vmem:[#allocation8 + $0x70] ss:$8 sps:$4 sm:$0xff]   ;;  %v1969_v22 = vld [vmem:[%s2688_s2] ss:$0 sm:$0xff] }
  0x75   :  { %354 = vmatpush1.bf16.msra.mxu1 %v2146_v8 }
  0x76   :  { %2089 = vmatmul.mubr.msk.bf16.vlgmr.msra.gmra.mrb[0].mxu0 %vm195_vm1, %v178_v7  ;;  %355 = vmatprep.subr.bf16.mxu1 %v2147_v9 }
  0x79   :  { %356 = vmatpush1.bf16.msra.mxu1 %v2149_v10 }
  0x7a   :  { %357 = vmatprep.subr.bf16.mxu1 %v2150_v11 }
  0x7d   :  { %358 = vmatpush1.bf16.msra.mxu1 %v2152_v12 }
  0x7e   :  { %359 = vmatprep.subr.bf16.mxu1 %v2153_v13 }
  0x81   :  { %360 = vmatpush1.bf16.msra.mxu1 %v2155_v14 }
  0x82   :  { %361 = vmatprep.subr.bf16.mxu1 %v2156_v15 }
  0x85   :  { %362 = vmatpush1.bf16.msra.mxu1 %v2158_v16 }
  0x86   :  { %363 = vmatprep.subr.bf16.mxu1 %v2159_v17 }
  0x89   :  { %364 = vmatpush1.bf16.msra.mxu1 %v2161_v18 }
  0x8a   :  { %365 = vmatprep.subr.bf16.mxu1 %v2162_v19 }
  0x8d   :  { %366 = vmatpush1.bf16.msra.mxu1 %v2164_v20 }
 0x149   :  { %v233_v23 = vpop.f32.mrb[0].mxu0 }
 0x14a   :  { %v234_v24 = vadd.f32 %v1969_v22, %v233_v23  ;;  %v2090_v25 = vpop.f32.mrb[1].mxu0 }
 0x14b   :  { %v236_v26 = vpop.f32.mrb[2].mxu0 }
 0x14c   :  { %vm239_vm2 = vcmp.gt.f32.partialorder %v234_v24, 0.0  ;;  %v240_v27 = vmul.f32 0.2, %v234_v24  ;;  %v2091_v28 = vpop.f32.mrb[3].mxu0 }
 0x14e   :  { %v241_v29 = vsel %vm239_vm2, %v234_v24, %v240_v27 }
 0x14f   :  { %v259_v30 = vpack.c.bf16 %v241_v29, %v241_v29 }
 0x151   :  { %384 = vmatmul.mubr.bf16.vlgmr.msra.gmra.mrb[0].mxu1 %v259_v30 }
 0x152   :  { %2314 = shalt.err (!%p2311_p0)  }
 0x153   :  { %s2315_s20 = scalar_lea.vmem %s169_s15, 8192  ;;  %p2320_p2 = scmp.lt.s32.totalorder %s169_s15, %s169_s15 }
 0x154   :  { %p2316_p1 = scmp.ne.s32.totalorder %s169_s15, %s2315_s20  ;;  %p2321_p3 = scmp.lt.s32.totalorder %s2315_s20, %s2315_s20 }
 0x156   :  { %p2322_p4 = por %p2321_p3, %p2320_p2 }
 0x158   :  { %p2323_p5 = pnand %p2322_p4, %p2316_p1 }
 0x15a   :  { %2326 = shalt.err (!%p2323_p5)  }
 0x15b   :  { %171 = dma.hbm_to_vmem [thread:$0]  %s2695_s9, 8192, %s169_s15, [#allocation5 + $0x2]  ;;  %v261_v31 = vlaneseq  ;;  %v258_v34 = vld [vmem:[#allocation10] ss:$4 sm:$0x3] }
 0x15c   :  { %v432_v14 = vld [vmem:[#allocation10 + $0x1] ss:$4 sm:$0x3]  ;;  %v447_v15 = vld [vmem:[#allocation10 + $0x2] ss:$4 sm:$0x3] }
 0x15d   :  { %v2510_v32 = vshrl.u32 %v261_v31, 7 }
 0x15f   :  { %v2513_v33 = vsub.s32 0, %v2510_v32  ;;  %v2516_v35 = vsub.s32 1, %v2510_v32 }
 0x161   :  { %v264_v36 = vrot.slane %v258_v34, %v2513_v33  ;;  %v268_v37 = vrot.slane %v258_v34, %v2516_v35  ;;  %v437_v16 = vrot.slane %v432_v14, %v2513_v33  ;;  %v441_v18 = vrot.slane %v432_v14, %v2516_v35 }
 0x162   :  { %v452_v21 = vrot.slane %v447_v15, %v2513_v33  ;;  %v456_v23 = vrot.slane %v447_v15, %v2516_v35 }
 0x224   :  { %v385_v38 = vpop.f32.mrb[0].mxu1 }
 0x225   :  { %v386_v39 = vadd.f32 %v385_v38, %v264_v36  ;;  %v387_v40 = vpop.f32.mrb[1].mxu1 }
 0x226   :  { %v388_v41 = vadd.f32 %v387_v40, %v268_v37  ;;  %v389_v42 = vpop.f32.mrb[2].mxu1 }
 0x227   :  { %v392_v43 = vrot.slane %v386_v39, 4  ;;  %v390_v44 = vpop.f32.mrb[3].mxu1 }
 0x228   :  { %v398_v45 = vrot.slane %v388_v41, 4 }
 0x229   :  { %v393_v46 = vadd.f32 %v392_v43, %v386_v39 }
 0x22a   :  { %v399_v47 = vadd.f32 %v398_v45, %v388_v41 }
 0x22b   :  { %v394_v48 = vrot.slane %v393_v46, 2 }
 0x22c   :  { %v400_v49 = vrot.slane %v399_v47, 2 }
 0x22d   :  { %v395_v50 = vadd.f32 %v394_v48, %v393_v46 }
 0x22e   :  { %v401_v51 = vadd.f32 %v400_v49, %v399_v47 }
 0x22f   :  { %v396_v52 = vrot.slane %v395_v50, 1 }
 0x230   :  { %v402_v53 = vrot.slane %v401_v51, 1 }
 0x231   :  { %v397_v54 = vadd.f32 %v396_v52, %v395_v50 }
 0x232   :  { %v403_v55 = vadd.f32 %v402_v53, %v401_v51 }
 0x233   :  { %v405_v56 = vmul.f32 0.125, %v397_v54 }
 0x234   :  { %v406_v57 = vmul.f32 0.125, %v403_v55 }
 0x235   :  { %v407_v58 = vsub.f32 %v386_v39, %v405_v56 }
 0x236   :  { %v408_v59 = vsub.f32 %v388_v41, %v406_v57 }
 0x237   :  { %v409_v60 = vmul.f32 %v407_v58, %v407_v58 }
 0x238   :  { %v410_v61 = vmul.f32 %v408_v59, %v408_v59 }
 0x239   :  { %v411_v62 = vrot.slane %v409_v60, 4 }
 0x23a   :  { %v417_v63 = vrot.slane %v410_v61, 4 }
 0x23b   :  { %v412_v0 = vadd.f32 %v411_v62, %v409_v60 }
 0x23c   :  { %v418_v1 = vadd.f32 %v417_v63, %v410_v61 }
 0x23d   :  { %v413_v2 = vrot.slane %v412_v0, 2 }
 0x23e   :  { %v419_v3 = vrot.slane %v418_v1, 2 }
 0x23f   :  { %v414_v4 = vadd.f32 %v413_v2, %v412_v0 }
 0x240   :  { %v420_v5 = vadd.f32 %v419_v3, %v418_v1 }
 0x241   :  { %v415_v6 = vrot.slane %v414_v4, 1 }
 0x242   :  { %v421_v7 = vrot.slane %v420_v5, 1 }
 0x243   :  { %v416_v8 = vadd.f32 %v415_v6, %v414_v4 }
 0x244   :  { %v422_v9 = vadd.f32 %v421_v7, %v420_v5 }
 0x245   :  { %v423_v10 = vmul.f32 0.125, %v416_v8 }
 0x246   :  { %v424_v11 = vmul.f32 0.125, %v422_v9 }
 0x247   :  { %v425_v12 = vadd.f32 0.8, %v423_v10 }
 0x248   :  { %v426_v13 = vadd.f32 0.8, %v424_v11 }
 0x249   :  { %2165 = vrsqrt.f32 %v425_v12 }
 0x24a   :  { %2167 = vrsqrt.f32 %v426_v13 }
 0x253   :  { %v2166_v17 = vpop.eup %2165 }
 0x254   :  { %v2168_v19 = vpop.eup %2167  ;;  %v429_v20 = vmul.f32 %v2166_v17, %v407_v58 }
 0x255   :  { %v430_v22 = vmul.f32 %v2168_v19, %v408_v59 }
 0x256   :  { %v444_v24 = vmul.f32 %v437_v16, %v429_v20 }
 0x257   :  { %v445_v25 = vmul.f32 %v441_v18, %v430_v22 }
 0x258   :  { %v459_v26 = vadd.f32 %v452_v21, %v444_v24 }
 0x259   :  { %v460_v27 = vadd.f32 %v456_v23, %v445_v25 }
 0x25a   :  { %vm461_vm3 = vcmp.gt.f32.partialorder %v459_v26, 0.0  ;;  %v463_v28 = vmul.f32 0.2, %v459_v26 }
 0x25b   :  { %vm462_vm4 = vcmp.gt.f32.partialorder %v460_v27, 0.0  ;;  %v464_v29 = vmul.f32 0.2, %v460_v27 }
 0x25c   :  { %v2524_v30 = vsel %vm461_vm3, %v459_v26, %v463_v28 }
 0x25d   :  { %v466_v31 = vsel %vm462_vm4, %v460_v27, %v464_v29 }
 0x25e   :  { %2333 = dma.done.wait [#allocation5], 8192 }
 0x25f   :  { %2334 = vsyncadd [#allocation5], 4294959104  ;;  %v537_v34 = vpack.c.bf16 %v466_v31, %v466_v31  ;;  %v472_v36 = vld [vmem:[#allocation2 + $0x8] sm:$0xff]  ;;  %v474_v37 = vld [vmem:[#allocation2 + $0x18] sm:$0xff] }
 0x260   :  { %v471_v38 = vld [vmem:[#allocation2] sm:$0xff]  ;;  %559 = vmatprep.subr.bf16.mxu0 %v472_v36  ;;  %600 = vmatprep.subr.bf16.mxu1 %v474_v37  ;;  %v473_v39 = vld [vmem:[#allocation2 + $0x10] sm:$0xff]  ;;  %v476_v40 = vld [vmem:[#allocation2 + $0x28] sm:$0xff] }
 0x261   :  { %591 = vmatprep.mubr.bf16.mxu0 %v537_v34  ;;  %632 = vmatprep.mubr.bf16.mxu1 %v537_v34  ;;  %v478_v41 = vld [vmem:[#allocation2 + $0x38] sm:$0xff]  ;;  %v475_v42 = vld [vmem:[#allocation2 + $0x20] sm:$0xff]  ;;  %v477_v43 = vld [vmem:[#allocation2 + $0x30] sm:$0xff] }
 0x262   :  { %560 = vmatpush1.bf16.msra.mxu0 %v471_v38  ;;  %601 = vmatpush1.bf16.msra.mxu1 %v473_v39  ;;  %v480_v44 = vld [vmem:[#allocation2 + $0x48] sm:$0xff]  ;;  %v482_v45 = vld [vmem:[#allocation2 + $0x58] sm:$0xff]  ;;  %v479_v46 = vld [vmem:[#allocation2 + $0x40] sm:$0xff] }
 0x263   :  { %561 = vmatprep.subr.bf16.mxu0 %v476_v40  ;;  %602 = vmatprep.subr.bf16.mxu1 %v478_v41  ;;  %v481_v47 = vld [vmem:[#allocation2 + $0x50] sm:$0xff]  ;;  %v484_v48 = vld [vmem:[#allocation2 + $0x68] sm:$0xff]  ;;  %v486_v49 = vld [vmem:[#allocation2 + $0x78] sm:$0xff]  ;;  %v536_v40 = vpack.c.bf16 %v2524_v30, %v2524_v30  ;;  %v2529_v41 = vsub.s32 2, %v2510_v32 }
 0x264   :  { %v483_v50 = vld [vmem:[#allocation2 + $0x60] sm:$0xff]  ;;  %v485_v51 = vld [vmem:[#allocation2 + $0x70] sm:$0xff]  ;;  %v488_v52 = vld [vmem:[#allocation2 + $0x88] sm:$0xff] }
 0x265   :  { %v490_v53 = vld [vmem:[#allocation2 + $0x98] sm:$0xff]  ;;  %v487_v54 = vld [vmem:[#allocation2 + $0x80] sm:$0xff]  ;;  %v489_v55 = vld [vmem:[#allocation2 + $0x90] sm:$0xff] }
 0x266   :  { %562 = vmatpush1.bf16.msra.mxu0 %v475_v42  ;;  %603 = vmatpush1.bf16.msra.mxu1 %v477_v43  ;;  %v492_v56 = vld [vmem:[#allocation2 + $0xa8] sm:$0xff]  ;;  %v494_v57 = vld [vmem:[#allocation2 + $0xb8] sm:$0xff]  ;;  %v491_v58 = vld [vmem:[#allocation2 + $0xa0] sm:$0xff]  ;;  %v2532_v43 = vsub.s32 3, %v2510_v32 }
 0x267   :  { %563 = vmatprep.subr.bf16.mxu0 %v480_v44  ;;  %604 = vmatprep.subr.bf16.mxu1 %v482_v45  ;;  %v493_v59 = vld [vmem:[#allocation2 + $0xb0] sm:$0xff]  ;;  %v496_v60 = vld [vmem:[#allocation2 + $0xc8] sm:$0xff]  ;;  %v498_v61 = vld [vmem:[#allocation2 + $0xd8] sm:$0xff] }
 0x268   :  { %v495_v62 = vld [vmem:[#allocation2 + $0xc0] sm:$0xff]  ;;  %v497_v63 = vld [vmem:[#allocation2 + $0xd0] sm:$0xff]  ;;  %v500_v0 = vld [vmem:[#allocation2 + $0xe8] sm:$0xff] }
 0x269   :  { %v502_v1 = vld [vmem:[#allocation2 + $0xf8] sm:$0xff]  ;;  %v499_v2 = vld [vmem:[#allocation2 + $0xe0] sm:$0xff]  ;;  %v501_v3 = vld [vmem:[#allocation2 + $0xf0] sm:$0xff] }
 0x26a   :  { %564 = vmatpush1.bf16.msra.mxu0 %v479_v46  ;;  %605 = vmatpush1.bf16.msra.mxu1 %v481_v47  ;;  %v504_v4 = vld [vmem:[#allocation2 + $0x108] sm:$0xff]  ;;  %v506_v5 = vld [vmem:[#allocation2 + $0x118] sm:$0xff]  ;;  %v503_v6 = vld [vmem:[#allocation2 + $0x100] sm:$0xff] }
 0x26b   :  { %565 = vmatprep.subr.bf16.mxu0 %v484_v48  ;;  %606 = vmatprep.subr.bf16.mxu1 %v486_v49  ;;  %v505_v7 = vld [vmem:[#allocation2 + $0x110] sm:$0xff]  ;;  %v508_v8 = vld [vmem:[#allocation2 + $0x128] sm:$0xff]  ;;  %v510_v9 = vld [vmem:[#allocation2 + $0x138] sm:$0xff] }
 0x26c   :  { %v507_v10 = vld [vmem:[#allocation2 + $0x120] sm:$0xff]  ;;  %v509_v11 = vld [vmem:[#allocation2 + $0x130] sm:$0xff]  ;;  %v512_v12 = vld [vmem:[#allocation2 + $0x148] sm:$0xff] }
 0x26d   :  { %v514_v13 = vld [vmem:[#allocation2 + $0x158] sm:$0xff]  ;;  %v511_v14 = vld [vmem:[#allocation2 + $0x140] sm:$0xff]  ;;  %v513_v15 = vld [vmem:[#allocation2 + $0x150] sm:$0xff] }
 0x26e   :  { %566 = vmatpush1.bf16.msra.mxu0 %v483_v50  ;;  %607 = vmatpush1.bf16.msra.mxu1 %v485_v51  ;;  %v516_v16 = vld [vmem:[#allocation2 + $0x168] sm:$0xff]  ;;  %v518_v17 = vld [vmem:[#allocation2 + $0x178] sm:$0xff]  ;;  %v515_v18 = vld [vmem:[#allocation2 + $0x160] sm:$0xff] }
 0x26f   :  { %567 = vmatprep.subr.bf16.mxu0 %v488_v52  ;;  %608 = vmatprep.subr.bf16.mxu1 %v490_v53  ;;  %v517_v19 = vld [vmem:[#allocation2 + $0x170] sm:$0xff]  ;;  %v520_v20 = vld [vmem:[#allocation2 + $0x188] sm:$0xff]  ;;  %v522_v21 = vld [vmem:[#allocation2 + $0x198] sm:$0xff] }
 0x270   :  { %v519_v22 = vld [vmem:[#allocation2 + $0x180] sm:$0xff]  ;;  %v521_v23 = vld [vmem:[#allocation2 + $0x190] sm:$0xff]  ;;  %v524_v24 = vld [vmem:[#allocation2 + $0x1a8] sm:$0xff] }
 0x271   :  { %v526_v25 = vld [vmem:[#allocation2 + $0x1b8] sm:$0xff]  ;;  %v523_v26 = vld [vmem:[#allocation2 + $0x1a0] sm:$0xff]  ;;  %v525_v27 = vld [vmem:[#allocation2 + $0x1b0] sm:$0xff] }
 0x272   :  { %568 = vmatpush1.bf16.msra.mxu0 %v487_v54  ;;  %609 = vmatpush1.bf16.msra.mxu1 %v489_v55  ;;  %v528_v28 = vld [vmem:[#allocation2 + $0x1c8] sm:$0xff]  ;;  %v530_v29 = vld [vmem:[#allocation2 + $0x1d8] sm:$0xff]  ;;  %v527_v31 = vld [vmem:[#allocation2 + $0x1c0] sm:$0xff] }
 0x273   :  { %569 = vmatprep.subr.bf16.mxu0 %v492_v56  ;;  %610 = vmatprep.subr.bf16.mxu1 %v494_v57  ;;  %v529_v34 = vld [vmem:[#allocation2 + $0x1d0] sm:$0xff]  ;;  %v532_v36 = vld [vmem:[#allocation2 + $0x1e8] sm:$0xff]  ;;  %v534_v37 = vld [vmem:[#allocation2 + $0x1f8] sm:$0xff] }
 0x274   :  { %v531_v38 = vld [vmem:[#allocation2 + $0x1e0] sm:$0xff]  ;;  %v533_v39 = vld [vmem:[#allocation2 + $0x1f0] sm:$0xff] }
 0x275   :  { %v535_v42 = vld [vmem:[#allocation11] ss:$4 sm:$0xf] }
 0x276   :  { %570 = vmatpush1.bf16.msra.mxu0 %v491_v58  ;;  %611 = vmatpush1.bf16.msra.mxu1 %v493_v59  ;;  %v542_v44 = vrot.slane %v535_v42, %v2513_v33  ;;  %v550_v45 = vrot.slane %v535_v42, %v2529_v41  ;;  %v546_v46 = vrot.slane %v535_v42, %v2516_v35 }
 0x277   :  { %571 = vmatprep.subr.bf16.mxu0 %v496_v60  ;;  %612 = vmatprep.subr.bf16.mxu1 %v498_v61  ;;  %v554_v47 = vrot.slane %v535_v42, %v2532_v43 }
 0x27a   :  { %572 = vmatpush1.bf16.msra.mxu0 %v495_v62  ;;  %613 = vmatpush1.bf16.msra.mxu1 %v497_v63 }
 0x27b   :  { %573 = vmatprep.subr.bf16.mxu0 %v500_v0  ;;  %614 = vmatprep.subr.bf16.mxu1 %v502_v1 }
 0x27e   :  { %574 = vmatpush1.bf16.msra.mxu0 %v499_v2  ;;  %615 = vmatpush1.bf16.msra.mxu1 %v501_v3 }
 0x27f   :  { %575 = vmatprep.subr.bf16.mxu0 %v504_v4  ;;  %616 = vmatprep.subr.bf16.mxu1 %v506_v5 }
 0x282   :  { %576 = vmatpush1.bf16.msra.mxu0 %v503_v6  ;;  %617 = vmatpush1.bf16.msra.mxu1 %v505_v7 }
 0x283   :  { %577 = vmatprep.subr.bf16.mxu0 %v508_v8  ;;  %618 = vmatprep.subr.bf16.mxu1 %v510_v9 }
 0x286   :  { %578 = vmatpush1.bf16.msra.mxu0 %v507_v10  ;;  %619 = vmatpush1.bf16.msra.mxu1 %v509_v11 }
 0x287   :  { %579 = vmatprep.subr.bf16.mxu0 %v512_v12  ;;  %620 = vmatprep.subr.bf16.mxu1 %v514_v13 }
 0x28a   :  { %580 = vmatpush1.bf16.msra.mxu0 %v511_v14  ;;  %621 = vmatpush1.bf16.msra.mxu1 %v513_v15 }
 0x28b   :  { %581 = vmatprep.subr.bf16.mxu0 %v516_v16  ;;  %622 = vmatprep.subr.bf16.mxu1 %v518_v17 }
 0x28e   :  { %582 = vmatpush1.bf16.msra.mxu0 %v515_v18  ;;  %623 = vmatpush1.bf16.msra.mxu1 %v517_v19 }
 0x28f   :  { %583 = vmatprep.subr.bf16.mxu0 %v520_v20  ;;  %624 = vmatprep.subr.bf16.mxu1 %v522_v21 }
 0x292   :  { %584 = vmatpush1.bf16.msra.mxu0 %v519_v22  ;;  %625 = vmatpush1.bf16.msra.mxu1 %v521_v23 }
 0x293   :  { %585 = vmatprep.subr.bf16.mxu0 %v524_v24  ;;  %626 = vmatprep.subr.bf16.mxu1 %v526_v25 }
 0x296   :  { %586 = vmatpush1.bf16.msra.mxu0 %v523_v26  ;;  %627 = vmatpush1.bf16.msra.mxu1 %v525_v27 }
 0x297   :  { %587 = vmatprep.subr.bf16.mxu0 %v528_v28  ;;  %628 = vmatprep.subr.bf16.mxu1 %v530_v29 }
 0x29a   :  { %588 = vmatpush1.bf16.msra.mxu0 %v527_v31  ;;  %629 = vmatpush1.bf16.msra.mxu1 %v529_v34 }
 0x29b   :  { %589 = vmatprep.subr.bf16.mxu0 %v532_v36  ;;  %630 = vmatprep.subr.bf16.mxu1 %v534_v37 }
 0x29e   :  { %590 = vmatpush1.bf16.msra.mxu0 %v531_v38  ;;  %631 = vmatpush1.bf16.msra.mxu1 %v533_v39 }
 0x2a1   :  { %592 = vmatmul.mubr.bf16.vlgmr.msra.gmra.mrb[4].mxu0 %v536_v40  ;;  %633 = vmatmul.mubr.bf16.vlgmr.msra.gmra.mrb[4].mxu1 %v536_v40 }
 0x374   :  { %v593_v30 = vpop.f32.mrb[4].mxu0  ;;  %v634_v48 = vpop.f32.mrb[4].mxu1 }
 0x375   :  { %v594_v49 = vadd.f32 %v593_v30, %v542_v44  ;;  %v635_v50 = vadd.f32 %v634_v48, %v550_v45  ;;  %v595_v51 = vpop.f32.mrb[5].mxu0  ;;  %v636_v52 = vpop.f32.mrb[5].mxu1 }
 0x376   :  { %v596_v53 = vadd.f32 %v595_v51, %v546_v46  ;;  %v637_v54 = vadd.f32 %v636_v52, %v554_v47  ;;  %v597_v55 = vpop.f32.mrb[6].mxu0  ;;  %v638_v56 = vpop.f32.mrb[6].mxu1 }
 0x377   :  { %v641_v57 = vrot.slane %v594_v49, 4  ;;  %v653_v58 = vrot.slane %v635_v50, 4  ;;  %v598_v59 = vpop.f32.mrb[7].mxu0  ;;  %v639_v60 = vpop.f32.mrb[7].mxu1 }
 0x378   :  { %v647_v61 = vrot.slane %v596_v53, 4  ;;  %v659_v62 = vrot.slane %v637_v54, 4 }
 0x379   :  { %v642_v63 = vadd.f32 %v641_v57, %v594_v49  ;;  %v654_v0 = vadd.f32 %v653_v58, %v635_v50 }
 0x37a   :  { %v648_v1 = vadd.f32 %v647_v61, %v596_v53  ;;  %v660_v2 = vadd.f32 %v659_v62, %v637_v54 }
 0x37b   :  { %v643_v3 = vrot.slane %v642_v63, 2  ;;  %v655_v4 = vrot.slane %v654_v0, 2 }
 0x37c   :  { %v649_v5 = vrot.slane %v648_v1, 2  ;;  %v661_v6 = vrot.slane %v660_v2, 2 }
 0x37d   :  { %v644_v7 = vadd.f32 %v643_v3, %v642_v63  ;;  %v656_v8 = vadd.f32 %v655_v4, %v654_v0  ;;  %v718_v4 = vld [vmem:[#allocation11 + $0x1] ss:$4 sm:$0xf] }
 0x37e   :  { %v650_v9 = vadd.f32 %v649_v5, %v648_v1  ;;  %v662_v10 = vadd.f32 %v661_v6, %v660_v2  ;;  %v745_v5 = vld [vmem:[#allocation11 + $0x2] ss:$4 sm:$0xf]  ;;  %v723_v6 = vrot.slane %v718_v4, %v2513_v33 }
 0x37f   :  { %v645_v11 = vrot.slane %v644_v7, 1  ;;  %v657_v12 = vrot.slane %v656_v8, 1 }
 0x380   :  { %v651_v13 = vrot.slane %v650_v9, 1  ;;  %v663_v14 = vrot.slane %v662_v10, 1 }
 0x381   :  { %v646_v15 = vadd.f32 %v645_v11, %v644_v7  ;;  %v658_v16 = vadd.f32 %v657_v12, %v656_v8  ;;  %v731_v8 = vrot.slane %v718_v4, %v2529_v41  ;;  %v750_v11 = vrot.slane %v745_v5, %v2513_v33 }
 0x382   :  { %v652_v17 = vadd.f32 %v651_v13, %v650_v9  ;;  %v664_v18 = vadd.f32 %v663_v14, %v662_v10  ;;  %v727_v12 = vrot.slane %v718_v4, %v2516_v35 }
 0x383   :  { %v665_v19 = vmul.f32 0.125, %v646_v15  ;;  %v667_v20 = vmul.f32 0.125, %v658_v16  ;;  %v758_v15 = vrot.slane %v745_v5, %v2529_v41  ;;  %v735_v16 = vrot.slane %v718_v4, %v2532_v43 }
 0x384   :  { %v666_v21 = vmul.f32 0.125, %v652_v17  ;;  %v668_v22 = vmul.f32 0.125, %v664_v18 }
 0x385   :  { %v669_v23 = vsub.f32 %v594_v49, %v665_v19  ;;  %v671_v24 = vsub.f32 %v635_v50, %v667_v20  ;;  %v754_v20 = vrot.slane %v745_v5, %v2516_v35 }
 0x386   :  { %v670_v25 = vsub.f32 %v596_v53, %v666_v21  ;;  %v672_v26 = vsub.f32 %v637_v54, %v668_v22 }
 0x387   :  { %v673_v27 = vmul.f32 %v669_v23, %v669_v23  ;;  %v675_v28 = vmul.f32 %v671_v24, %v671_v24 }
 0x388   :  { %v674_v29 = vmul.f32 %v670_v25, %v670_v25  ;;  %v676_v31 = vmul.f32 %v672_v26, %v672_v26 }
 0x389   :  { %v677_v34 = vrot.slane %v673_v27, 4  ;;  %v689_v36 = vrot.slane %v675_v28, 4 }
 0x38a   :  { %v683_v37 = vrot.slane %v674_v29, 4  ;;  %v695_v38 = vrot.slane %v676_v31, 4 }
 0x38b   :  { %v678_v39 = vadd.f32 %v677_v34, %v673_v27  ;;  %v690_v40 = vadd.f32 %v689_v36, %v675_v28  ;;  %v762_v27 = vrot.slane %v745_v5, %v2532_v43 }
 0x38c   :  { %v684_v42 = vadd.f32 %v683_v37, %v674_v29  ;;  %v696_v44 = vadd.f32 %v695_v38, %v676_v31 }
 0x38d   :  { %v679_v45 = vrot.slane %v678_v39, 2  ;;  %v691_v46 = vrot.slane %v690_v40, 2 }
 0x38e   :  { %v685_v47 = vrot.slane %v684_v42, 2  ;;  %v697_v30 = vrot.slane %v696_v44, 2 }
 0x38f   :  { %v680_v48 = vadd.f32 %v679_v45, %v678_v39  ;;  %v692_v49 = vadd.f32 %v691_v46, %v690_v40 }
 0x390   :  { %v686_v50 = vadd.f32 %v685_v47, %v684_v42  ;;  %v698_v51 = vadd.f32 %v697_v30, %v696_v44 }
 0x391   :  { %v681_v52 = vrot.slane %v680_v48, 1  ;;  %v693_v53 = vrot.slane %v692_v49, 1 }
 0x392   :  { %v687_v54 = vrot.slane %v686_v50, 1  ;;  %v699_v55 = vrot.slane %v698_v51, 1 }
 0x393   :  { %v682_v56 = vadd.f32 %v681_v52, %v680_v48  ;;  %v694_v57 = vadd.f32 %v693_v53, %v692_v49 }
 0x394   :  { %v688_v58 = vadd.f32 %v687_v54, %v686_v50  ;;  %v700_v59 = vadd.f32 %v699_v55, %v698_v51 }
 0x395   :  { %v701_v60 = vmul.f32 0.125, %v682_v56  ;;  %v703_v61 = vmul.f32 0.125, %v694_v57 }
 0x396   :  { %v702_v62 = vmul.f32 0.125, %v688_v58  ;;  %v704_v63 = vmul.f32 0.125, %v700_v59 }
 0x397   :  { %v705_v0 = vadd.f32 0.8, %v701_v60  ;;  %v707_v1 = vadd.f32 0.8, %v703_v61 }
 0x398   :  { %v706_v2 = vadd.f32 0.8, %v702_v62  ;;  %v708_v3 = vadd.f32 0.8, %v704_v63 }
 0x399   :  { %2169 = vrsqrt.f32 %v705_v0 }
 0x39a   :  { %2171 = vrsqrt.f32 %v707_v1 }
 0x39b   :  { %2173 = vrsqrt.f32 %v706_v2 }
 0x39c   :  { %2175 = vrsqrt.f32 %v708_v3 }
 0x3a3   :  { %v2170_v7 = vpop.eup %2169 }
 0x3a4   :  { %v2172_v9 = vpop.eup %2171  ;;  %v713_v10 = vmul.f32 %v2170_v7, %v669_v23 }
 0x3a5   :  { %v2174_v13 = vpop.eup %2173  ;;  %v715_v14 = vmul.f32 %v2172_v9, %v671_v24 }
 0x3a6   :  { %v2176_v17 = vpop.eup %2175  ;;  %v740_v18 = vmul.f32 %v723_v6, %v713_v10  ;;  %v714_v19 = vmul.f32 %v2174_v13, %v670_v25 }
 0x3a7   :  { %v742_v21 = vmul.f32 %v731_v8, %v715_v14  ;;  %v716_v22 = vmul.f32 %v2176_v17, %v672_v26 }
 0x3a8   :  { %v767_v23 = vadd.f32 %v750_v11, %v740_v18  ;;  %v741_v28 = vmul.f32 %v727_v12, %v714_v19 }
 0x3a9   :  { %v769_v29 = vadd.f32 %v758_v15, %v742_v21  ;;  %v743_v31 = vmul.f32 %v735_v16, %v716_v22 }
 0x3aa   :  { %vm771_vm5 = vcmp.gt.f32.partialorder %v767_v23, 0.0  ;;  %v775_v34 = vmul.f32 0.2, %v767_v23  ;;  %v768_v24 = vadd.f32 %v754_v20, %v741_v28 }
 0x3ab   :  { %vm773_vm6 = vcmp.gt.f32.partialorder %v769_v29, 0.0  ;;  %v777_v36 = vmul.f32 0.2, %v769_v29  ;;  %v770_v37 = vadd.f32 %v762_v27, %v743_v31 }
 0x3ac   :  { %v2546_v38 = vsel %vm771_vm5, %v767_v23, %v775_v34  ;;  %vm772_vm7 = vcmp.gt.f32.partialorder %v768_v24, 0.0  ;;  %v776_v25 = vmul.f32 0.2, %v768_v24 }
 0x3ad   :  { %v2548_v39 = vsel %vm773_vm6, %v769_v29, %v777_v36  ;;  %vm774_vm8 = vcmp.gt.f32.partialorder %v770_v37, 0.0  ;;  %v778_v26 = vmul.f32 0.2, %v770_v37 }
 0x3ae   :  { %v780_v40 = vsel %vm772_vm7, %v768_v24, %v776_v25 }
 0x3af   :  { %v2550_v42 = vsel %vm774_vm8, %v770_v37, %v778_v26 }
 0x3b0   :  { %2335 = dma.done.wait [#allocation5 + $0x1], 32768 }
 0x3b1   :  { %2336 = vsyncadd [#allocation5 + $0x1], 4294934528  ;;  %v2552_v44 = vpack.c.bf16 %v780_v40, %v780_v40  ;;  %v788_v45 = vld [vmem:[#allocation3 + $0x8] sm:$0xff]  ;;  %v790_v46 = vld [vmem:[#allocation3 + $0x18] sm:$0xff] }
 0x3b2   :  { %v787_v47 = vld [vmem:[#allocation3] sm:$0xff]  ;;  %1089 = vmatprep.subr.bf16.mxu0 %v788_v45  ;;  %1171 = vmatprep.subr.bf16.mxu1 %v790_v46  ;;  %v789_v30 = vld [vmem:[#allocation3 + $0x10] sm:$0xff]  ;;  %v796_v48 = vld [vmem:[#allocation3 + $0x48] sm:$0xff] }
 0x3b3   :  { %1121 = vmatprep.mubr.bf16.mxu0 %v2552_v44  ;;  %1203 = vmatprep.mubr.bf16.mxu1 %v2552_v44  ;;  %v798_v49 = vld [vmem:[#allocation3 + $0x58] sm:$0xff]  ;;  %v795_v50 = vld [vmem:[#allocation3 + $0x40] sm:$0xff]  ;;  %v797_v51 = vld [vmem:[#allocation3 + $0x50] sm:$0xff] }
 0x3b4   :  { %1090 = vmatpush1.bf16.msra.mxu0 %v787_v47  ;;  %1172 = vmatpush1.bf16.msra.mxu1 %v789_v30  ;;  %v804_v52 = vld [vmem:[#allocation3 + $0x88] sm:$0xff]  ;;  %v806_v53 = vld [vmem:[#allocation3 + $0x98] sm:$0xff]  ;;  %v803_v54 = vld [vmem:[#allocation3 + $0x80] sm:$0xff] }
 0x3b5   :  { %1091 = vmatprep.subr.bf16.mxu0 %v796_v48  ;;  %1173 = vmatprep.subr.bf16.mxu1 %v798_v49  ;;  %v805_v55 = vld [vmem:[#allocation3 + $0x90] sm:$0xff]  ;;  %v812_v56 = vld [vmem:[#allocation3 + $0xc8] sm:$0xff]  ;;  %v814_v57 = vld [vmem:[#allocation3 + $0xd8] sm:$0xff] }
 0x3b6   :  { %v811_v58 = vld [vmem:[#allocation3 + $0xc0] sm:$0xff]  ;;  %v813_v59 = vld [vmem:[#allocation3 + $0xd0] sm:$0xff]  ;;  %v820_v60 = vld [vmem:[#allocation3 + $0x108] sm:$0xff] }
 0x3b7   :  { %v822_v61 = vld [vmem:[#allocation3 + $0x118] sm:$0xff]  ;;  %v819_v62 = vld [vmem:[#allocation3 + $0x100] sm:$0xff]  ;;  %v821_v63 = vld [vmem:[#allocation3 + $0x110] sm:$0xff] }
 0x3b8   :  { %1092 = vmatpush1.bf16.msra.mxu0 %v795_v50  ;;  %1174 = vmatpush1.bf16.msra.mxu1 %v797_v51  ;;  %v828_v0 = vld [vmem:[#allocation3 + $0x148] sm:$0xff]  ;;  %v830_v1 = vld [vmem:[#allocation3 + $0x158] sm:$0xff]  ;;  %v827_v2 = vld [vmem:[#allocation3 + $0x140] sm:$0xff] }
 0x3b9   :  { %1093 = vmatprep.subr.bf16.mxu0 %v804_v52  ;;  %1175 = vmatprep.subr.bf16.mxu1 %v806_v53  ;;  %v829_v3 = vld [vmem:[#allocation3 + $0x150] sm:$0xff]  ;;  %v836_v4 = vld [vmem:[#allocation3 + $0x188] sm:$0xff]  ;;  %v838_v5 = vld [vmem:[#allocation3 + $0x198] sm:$0xff] }
 0x3ba   :  { %v835_v6 = vld [vmem:[#allocation3 + $0x180] sm:$0xff]  ;;  %v837_v7 = vld [vmem:[#allocation3 + $0x190] sm:$0xff]  ;;  %v844_v8 = vld [vmem:[#allocation3 + $0x1c8] sm:$0xff] }
 0x3bb   :  { %v846_v9 = vld [vmem:[#allocation3 + $0x1d8] sm:$0xff]  ;;  %v843_v10 = vld [vmem:[#allocation3 + $0x1c0] sm:$0xff]  ;;  %v845_v11 = vld [vmem:[#allocation3 + $0x1d0] sm:$0xff] }
 0x3bc   :  { %1094 = vmatpush1.bf16.msra.mxu0 %v803_v54  ;;  %1176 = vmatpush1.bf16.msra.mxu1 %v805_v55  ;;  %v852_v12 = vld [vmem:[#allocation3 + $0x208] sm:$0xff]  ;;  %v854_v13 = vld [vmem:[#allocation3 + $0x218] sm:$0xff]  ;;  %v851_v14 = vld [vmem:[#allocation3 + $0x200] sm:$0xff]  ;;  %v2558_v55 = vpack.c.bf16 %v2546_v38, %v2546_v38 }
 0x3bd   :  { %1095 = vmatprep.subr.bf16.mxu0 %v812_v56  ;;  %1177 = vmatprep.subr.bf16.mxu1 %v814_v57  ;;  %v853_v15 = vld [vmem:[#allocation3 + $0x210] sm:$0xff]  ;;  %v860_v16 = vld [vmem:[#allocation3 + $0x248] sm:$0xff]  ;;  %v862_v17 = vld [vmem:[#allocation3 + $0x258] sm:$0xff] }
 0x3be   :  { %v859_v18 = vld [vmem:[#allocation3 + $0x240] sm:$0xff]  ;;  %v861_v19 = vld [vmem:[#allocation3 + $0x250] sm:$0xff]  ;;  %v868_v20 = vld [vmem:[#allocation3 + $0x288] sm:$0xff] }
 0x3bf   :  { %v870_v21 = vld [vmem:[#allocation3 + $0x298] sm:$0xff]  ;;  %v867_v22 = vld [vmem:[#allocation3 + $0x280] sm:$0xff]  ;;  %v869_v27 = vld [vmem:[#allocation3 + $0x290] sm:$0xff] }
 0x3c0   :  { %1096 = vmatpush1.bf16.msra.mxu0 %v811_v58  ;;  %1178 = vmatpush1.bf16.msra.mxu1 %v813_v59  ;;  %v876_v23 = vld [vmem:[#allocation3 + $0x2c8] sm:$0xff]  ;;  %v878_v28 = vld [vmem:[#allocation3 + $0x2d8] sm:$0xff]  ;;  %v875_v29 = vld [vmem:[#allocation3 + $0x2c0] sm:$0xff] }
 0x3c1   :  { %1097 = vmatprep.subr.bf16.mxu0 %v820_v60  ;;  %1179 = vmatprep.subr.bf16.mxu1 %v822_v61  ;;  %v877_v31 = vld [vmem:[#allocation3 + $0x2d0] sm:$0xff]  ;;  %v884_v34 = vld [vmem:[#allocation3 + $0x308] sm:$0xff]  ;;  %v886_v24 = vld [vmem:[#allocation3 + $0x318] sm:$0xff]  ;;  %v2562_v60 = vpack.c.bf16 %v2550_v42, %v2550_v42 }
 0x3c2   :  { %v883_v36 = vld [vmem:[#allocation3 + $0x300] sm:$0xff]  ;;  %v885_v37 = vld [vmem:[#allocation3 + $0x310] sm:$0xff]  ;;  %v892_v25 = vld [vmem:[#allocation3 + $0x348] sm:$0xff] }
 0x3c3   :  { %v894_v26 = vld [vmem:[#allocation3 + $0x358] sm:$0xff]  ;;  %v891_v40 = vld [vmem:[#allocation3 + $0x340] sm:$0xff]  ;;  %v893_v45 = vld [vmem:[#allocation3 + $0x350] sm:$0xff] }
 0x3c4   :  { %1098 = vmatpush1.bf16.msra.mxu0 %v819_v62  ;;  %1180 = vmatpush1.bf16.msra.mxu1 %v821_v63  ;;  %v900_v46 = vld [vmem:[#allocation3 + $0x388] sm:$0xff]  ;;  %v902_v47 = vld [vmem:[#allocation3 + $0x398] sm:$0xff]  ;;  %v899_v30 = vld [vmem:[#allocation3 + $0x380] sm:$0xff] }
 0x3c5   :  { %1099 = vmatprep.subr.bf16.mxu0 %v828_v0  ;;  %1181 = vmatprep.subr.bf16.mxu1 %v830_v1  ;;  %v901_v48 = vld [vmem:[#allocation3 + $0x390] sm:$0xff]  ;;  %v908_v49 = vld [vmem:[#allocation3 + $0x3c8] sm:$0xff]  ;;  %v910_v50 = vld [vmem:[#allocation3 + $0x3d8] sm:$0xff] }
 0x3c6   :  { %v907_v51 = vld [vmem:[#allocation3 + $0x3c0] sm:$0xff]  ;;  %v909_v52 = vld [vmem:[#allocation3 + $0x3d0] sm:$0xff]  ;;  %v916_v53 = vld [vmem:[#allocation3 + $0x408] sm:$0xff] }
 0x3c7   :  { %v918_v54 = vld [vmem:[#allocation3 + $0x418] sm:$0xff]  ;;  %v915_v56 = vld [vmem:[#allocation3 + $0x400] sm:$0xff]  ;;  %v917_v57 = vld [vmem:[#allocation3 + $0x410] sm:$0xff] }
 0x3c8   :  { %1100 = vmatpush1.bf16.msra.mxu0 %v827_v2  ;;  %1182 = vmatpush1.bf16.msra.mxu1 %v829_v3  ;;  %v924_v58 = vld [vmem:[#allocation3 + $0x448] sm:$0xff]  ;;  %v926_v59 = vld [vmem:[#allocation3 + $0x458] sm:$0xff]  ;;  %v923_v38 = vld [vmem:[#allocation3 + $0x440] sm:$0xff] }
 0x3c9   :  { %1101 = vmatprep.subr.bf16.mxu0 %v836_v4  ;;  %1183 = vmatprep.subr.bf16.mxu1 %v838_v5  ;;  %v925_v61 = vld [vmem:[#allocation3 + $0x450] sm:$0xff]  ;;  %v932_v62 = vld [vmem:[#allocation3 + $0x488] sm:$0xff]  ;;  %v934_v63 = vld [vmem:[#allocation3 + $0x498] sm:$0xff] }
 0x3ca   :  { %v931_v42 = vld [vmem:[#allocation3 + $0x480] sm:$0xff]  ;;  %v933_v0 = vld [vmem:[#allocation3 + $0x490] sm:$0xff]  ;;  %v940_v1 = vld [vmem:[#allocation3 + $0x4c8] sm:$0xff] }
 0x3cb   :  { %v942_v2 = vld [vmem:[#allocation3 + $0x4d8] sm:$0xff]  ;;  %v939_v3 = vld [vmem:[#allocation3 + $0x4c0] sm:$0xff]  ;;  %v941_v4 = vld [vmem:[#allocation3 + $0x4d0] sm:$0xff] }
 0x3cc   :  { %1102 = vmatpush1.bf16.msra.mxu0 %v835_v6  ;;  %1184 = vmatpush1.bf16.msra.mxu1 %v837_v7  ;;  %v948_v5 = vld [vmem:[#allocation3 + $0x508] sm:$0xff]  ;;  %v950_v6 = vld [vmem:[#allocation3 + $0x518] sm:$0xff]  ;;  %v947_v7 = vld [vmem:[#allocation3 + $0x500] sm:$0xff] }
 0x3cd   :  { %1103 = vmatprep.subr.bf16.mxu0 %v844_v8  ;;  %1185 = vmatprep.subr.bf16.mxu1 %v846_v9  ;;  %v949_v8 = vld [vmem:[#allocation3 + $0x510] sm:$0xff]  ;;  %v956_v9 = vld [vmem:[#allocation3 + $0x548] sm:$0xff] }
 0x3d0   :  { %1104 = vmatpush1.bf16.msra.mxu0 %v843_v10  ;;  %1186 = vmatpush1.bf16.msra.mxu1 %v845_v11  ;;  %v958_v10 = vld [vmem:[#allocation3 + $0x558] sm:$0xff]  ;;  %v955_v11 = vld [vmem:[#allocation3 + $0x540] sm:$0xff] }
 0x3d1   :  { %1105 = vmatprep.subr.bf16.mxu0 %v852_v12  ;;  %1187 = vmatprep.subr.bf16.mxu1 %v854_v13  ;;  %v957_v12 = vld [vmem:[#allocation3 + $0x550] sm:$0xff]  ;;  %v964_v13 = vld [vmem:[#allocation3 + $0x588] sm:$0xff] }
 0x3d4   :  { %1106 = vmatpush1.bf16.msra.mxu0 %v851_v14  ;;  %1188 = vmatpush1.bf16.msra.mxu1 %v853_v15  ;;  %v966_v14 = vld [vmem:[#allocation3 + $0x598] sm:$0xff]  ;;  %v963_v15 = vld [vmem:[#allocation3 + $0x580] sm:$0xff] }
 0x3d5   :  { %1107 = vmatprep.subr.bf16.mxu0 %v860_v16  ;;  %1189 = vmatprep.subr.bf16.mxu1 %v862_v17  ;;  %v965_v16 = vld [vmem:[#allocation3 + $0x590] sm:$0xff]  ;;  %v972_v17 = vld [vmem:[#allocation3 + $0x5c8] sm:$0xff] }
 0x3d8   :  { %1108 = vmatpush1.bf16.msra.mxu0 %v859_v18  ;;  %1190 = vmatpush1.bf16.msra.mxu1 %v861_v19  ;;  %v974_v18 = vld [vmem:[#allocation3 + $0x5d8] sm:$0xff]  ;;  %v971_v19 = vld [vmem:[#allocation3 + $0x5c0] sm:$0xff] }
 0x3d9   :  { %1109 = vmatprep.subr.bf16.mxu0 %v868_v20  ;;  %1191 = vmatprep.subr.bf16.mxu1 %v870_v21  ;;  %v973_v20 = vld [vmem:[#allocation3 + $0x5d0] sm:$0xff]  ;;  %v980_v21 = vld [vmem:[#allocation3 + $0x608] sm:$0xff] }
 0x3dc   :  { %1110 = vmatpush1.bf16.msra.mxu0 %v867_v22  ;;  %1192 = vmatpush1.bf16.msra.mxu1 %v869_v27  ;;  %v982_v22 = vld [vmem:[#allocation3 + $0x618] sm:$0xff]  ;;  %v979_v27 = vld [vmem:[#allocation3 + $0x600] sm:$0xff] }
 0x3dd   :  { %1111 = vmatprep.subr.bf16.mxu0 %v876_v23  ;;  %1193 = vmatprep.subr.bf16.mxu1 %v878_v28  ;;  %v981_v23 = vld [vmem:[#allocation3 + $0x610] sm:$0xff]  ;;  %v988_v28 = vld [vmem:[#allocation3 + $0x648] sm:$0xff] }
 0x3e0   :  { %1112 = vmatpush1.bf16.msra.mxu0 %v875_v29  ;;  %1194 = vmatpush1.bf16.msra.mxu1 %v877_v31  ;;  %v990_v29 = vld [vmem:[#allocation3 + $0x658] sm:$0xff]  ;;  %v987_v31 = vld [vmem:[#allocation3 + $0x640] sm:$0xff] }
 0x3e1   :  { %1113 = vmatprep.subr.bf16.mxu0 %v884_v34  ;;  %1195 = vmatprep.subr.bf16.mxu1 %v886_v24  ;;  %v989_v34 = vld [vmem:[#allocation3 + $0x650] sm:$0xff]  ;;  %v996_v24 = vld [vmem:[#allocation3 + $0x688] sm:$0xff] }
 0x3e4   :  { %1114 = vmatpush1.bf16.msra.mxu0 %v883_v36  ;;  %1196 = vmatpush1.bf16.msra.mxu1 %v885_v37  ;;  %v998_v36 = vld [vmem:[#allocation3 + $0x698] sm:$0xff]  ;;  %v995_v37 = vld [vmem:[#allocation3 + $0x680] sm:$0xff] }
 0x3e5   :  { %1115 = vmatprep.subr.bf16.mxu0 %v892_v25  ;;  %1197 = vmatprep.subr.bf16.mxu1 %v894_v26  ;;  %v997_v25 = vld [vmem:[#allocation3 + $0x690] sm:$0xff]  ;;  %v1004_v26 = vld [vmem:[#allocation3 + $0x6c8] sm:$0xff] }
 0x3e8   :  { %1116 = vmatpush1.bf16.msra.mxu0 %v891_v40  ;;  %1198 = vmatpush1.bf16.msra.mxu1 %v893_v45  ;;  %v1006_v40 = vld [vmem:[#allocation3 + $0x6d8] sm:$0xff]  ;;  %v1003_v45 = vld [vmem:[#allocation3 + $0x6c0] sm:$0xff] }
 0x3e9   :  { %1117 = vmatprep.subr.bf16.mxu0 %v900_v46  ;;  %1199 = vmatprep.subr.bf16.mxu1 %v902_v47  ;;  %v1005_v46 = vld [vmem:[#allocation3 + $0x6d0] sm:$0xff]  ;;  %v1012_v47 = vld [vmem:[#allocation3 + $0x708] sm:$0xff] }
 0x3ec   :  { %1118 = vmatpush1.bf16.msra.mxu0 %v899_v30  ;;  %1200 = vmatpush1.bf16.msra.mxu1 %v901_v48  ;;  %v1014_v30 = vld [vmem:[#allocation3 + $0x718] sm:$0xff]  ;;  %v1011_v48 = vld [vmem:[#allocation3 + $0x700] sm:$0xff] }
 0x3ed   :  { %1119 = vmatprep.subr.bf16.mxu0 %v908_v49  ;;  %1201 = vmatprep.subr.bf16.mxu1 %v910_v50  ;;  %v1013_v49 = vld [vmem:[#allocation3 + $0x710] sm:$0xff]  ;;  %v1020_v50 = vld [vmem:[#allocation3 + $0x748] sm:$0xff] }
 0x3f0   :  { %1120 = vmatpush1.bf16.msra.mxu0 %v907_v51  ;;  %1202 = vmatpush1.bf16.msra.mxu1 %v909_v52  ;;  %v1022_v51 = vld [vmem:[#allocation3 + $0x758] sm:$0xff]  ;;  %v1019_v52 = vld [vmem:[#allocation3 + $0x740] sm:$0xff] }
 0x3f1   :  { %1130 = vmatprep.subr.bf16.mxu0 %v916_v53  ;;  %1212 = vmatprep.subr.bf16.mxu1 %v918_v54  ;;  %v1021_v53 = vld [vmem:[#allocation3 + $0x750] sm:$0xff]  ;;  %v1028_v54 = vld [vmem:[#allocation3 + $0x788] sm:$0xff] }
 0x3f3   :  { %1122 = vmatmul.mubr.bf16.vlgmr.msra.gmra.mrb[8].mxu0 %v2558_v55  ;;  %1204 = vmatmul.mubr.bf16.vlgmr.msra.gmra.mrb[8].mxu1 %v2558_v55 }
 0x3f4   :  { %1131 = vmatpush1.bf16.msra.mxu0 %v915_v56  ;;  %1213 = vmatpush1.bf16.msra.mxu1 %v917_v57  ;;  %v1030_v56 = vld [vmem:[#allocation3 + $0x798] sm:$0xff]  ;;  %v1027_v57 = vld [vmem:[#allocation3 + $0x780] sm:$0xff] }
 0x3f5   :  { %1132 = vmatprep.subr.bf16.mxu0 %v924_v58  ;;  %1214 = vmatprep.subr.bf16.mxu1 %v926_v59  ;;  %v1029_v58 = vld [vmem:[#allocation3 + $0x790] sm:$0xff]  ;;  %v1036_v59 = vld [vmem:[#allocation3 + $0x7c8] sm:$0xff] }
 0x3f6   :  { %1162 = vmatprep.mubr.bf16.mxu0 %v2562_v60  ;;  %1244 = vmatprep.mubr.bf16.mxu1 %v2562_v60 }
 0x3f8   :  { %1133 = vmatpush1.bf16.msra.mxu0 %v923_v38  ;;  %1215 = vmatpush1.bf16.msra.mxu1 %v925_v61  ;;  %v1038_v38 = vld [vmem:[#allocation3 + $0x7d8] sm:$0xff]  ;;  %v1035_v61 = vld [vmem:[#allocation3 + $0x7c0] sm:$0xff] }
 0x3f9   :  { %1134 = vmatprep.subr.bf16.mxu0 %v932_v62  ;;  %1216 = vmatprep.subr.bf16.mxu1 %v934_v63  ;;  %v1037_v62 = vld [vmem:[#allocation3 + $0x7d0] sm:$0xff]  ;;  %v792_v63 = vld [vmem:[#allocation3 + $0x28] sm:$0xff] }
 0x3fc   :  { %1135 = vmatpush1.bf16.msra.mxu0 %v931_v42  ;;  %1217 = vmatpush1.bf16.msra.mxu1 %v933_v0  ;;  %v794_v42 = vld [vmem:[#allocation3 + $0x38] sm:$0xff]  ;;  %v2570_v0 = vpack.c.bf16 %v2548_v39, %v2548_v39  ;;  %v808_v39 = vld [vmem:[#allocation3 + $0xa8] sm:$0xff] }
 0x3fd   :  { %1136 = vmatprep.subr.bf16.mxu0 %v940_v1  ;;  %1218 = vmatprep.subr.bf16.mxu1 %v942_v2  ;;  %v791_v1 = vld [vmem:[#allocation3 + $0x20] sm:$0xff]  ;;  %v793_v2 = vld [vmem:[#allocation3 + $0x30] sm:$0xff] }
 0x400   :  { %1137 = vmatpush1.bf16.msra.mxu0 %v939_v3  ;;  %1219 = vmatpush1.bf16.msra.mxu1 %v941_v4  ;;  %v800_v3 = vld [vmem:[#allocation3 + $0x68] sm:$0xff]  ;;  %v802_v4 = vld [vmem:[#allocation3 + $0x78] sm:$0xff] }
 0x401   :  { %1138 = vmatprep.subr.bf16.mxu0 %v948_v5  ;;  %1220 = vmatprep.subr.bf16.mxu1 %v950_v6  ;;  %v799_v5 = vld [vmem:[#allocation3 + $0x60] sm:$0xff]  ;;  %v801_v6 = vld [vmem:[#allocation3 + $0x70] sm:$0xff] }
 0x404   :  { %1139 = vmatpush1.bf16.msra.mxu0 %v947_v7  ;;  %1221 = vmatpush1.bf16.msra.mxu1 %v949_v8  ;;  %v810_v7 = vld [vmem:[#allocation3 + $0xb8] sm:$0xff]  ;;  %v807_v8 = vld [vmem:[#allocation3 + $0xa0] sm:$0xff] }
 0x405   :  { %1140 = vmatprep.subr.bf16.mxu0 %v956_v9  ;;  %1222 = vmatprep.subr.bf16.mxu1 %v958_v10  ;;  %v809_v9 = vld [vmem:[#allocation3 + $0xb0] sm:$0xff]  ;;  %v816_v10 = vld [vmem:[#allocation3 + $0xe8] sm:$0xff] }
 0x408   :  { %1141 = vmatpush1.bf16.msra.mxu0 %v955_v11  ;;  %1223 = vmatpush1.bf16.msra.mxu1 %v957_v12  ;;  %v818_v11 = vld [vmem:[#allocation3 + $0xf8] sm:$0xff]  ;;  %v815_v12 = vld [vmem:[#allocation3 + $0xe0] sm:$0xff] }
 0x409   :  { %1142 = vmatprep.subr.bf16.mxu0 %v964_v13  ;;  %1224 = vmatprep.subr.bf16.mxu1 %v966_v14  ;;  %v817_v13 = vld [vmem:[#allocation3 + $0xf0] sm:$0xff]  ;;  %v824_v14 = vld [vmem:[#allocation3 + $0x128] sm:$0xff] }
 0x40c   :  { %1143 = vmatpush1.bf16.msra.mxu0 %v963_v15  ;;  %1225 = vmatpush1.bf16.msra.mxu1 %v965_v16  ;;  %v826_v15 = vld [vmem:[#allocation3 + $0x138] sm:$0xff]  ;;  %v825_v16 = vld [vmem:[#allocation3 + $0x130] sm:$0xff] }
 0x40d   :  { %1144 = vmatprep.subr.bf16.mxu0 %v972_v17  ;;  %1226 = vmatprep.subr.bf16.mxu1 %v974_v18  ;;  %v832_v17 = vld [vmem:[#allocation3 + $0x168] sm:$0xff]  ;;  %v834_v18 = vld [vmem:[#allocation3 + $0x178] sm:$0xff] }
 0x410   :  { %1145 = vmatpush1.bf16.msra.mxu0 %v971_v19  ;;  %1227 = vmatpush1.bf16.msra.mxu1 %v973_v20  ;;  %v831_v19 = vld [vmem:[#allocation3 + $0x160] sm:$0xff]  ;;  %v833_v20 = vld [vmem:[#allocation3 + $0x170] sm:$0xff] }
 0x411   :  { %1146 = vmatprep.subr.bf16.mxu0 %v980_v21  ;;  %1228 = vmatprep.subr.bf16.mxu1 %v982_v22  ;;  %v840_v21 = vld [vmem:[#allocation3 + $0x1a8] sm:$0xff]  ;;  %v842_v22 = vld [vmem:[#allocation3 + $0x1b8] sm:$0xff] }
 0x414   :  { %1147 = vmatpush1.bf16.msra.mxu0 %v979_v27  ;;  %1229 = vmatpush1.bf16.msra.mxu1 %v981_v23  ;;  %v839_v27 = vld [vmem:[#allocation3 + $0x1a0] sm:$0xff]  ;;  %v841_v23 = vld [vmem:[#allocation3 + $0x1b0] sm:$0xff] }
 0x415   :  { %1148 = vmatprep.subr.bf16.mxu0 %v988_v28  ;;  %1230 = vmatprep.subr.bf16.mxu1 %v990_v29  ;;  %v848_v28 = vld [vmem:[#allocation3 + $0x1e8] sm:$0xff]  ;;  %v850_v29 = vld [vmem:[#allocation3 + $0x1f8] sm:$0xff] }
 0x418   :  { %1149 = vmatpush1.bf16.msra.mxu0 %v987_v31  ;;  %1231 = vmatpush1.bf16.msra.mxu1 %v989_v34  ;;  %v847_v31 = vld [vmem:[#allocation3 + $0x1e0] sm:$0xff]  ;;  %v849_v34 = vld [vmem:[#allocation3 + $0x1f0] sm:$0xff] }
 0x419   :  { %1150 = vmatprep.subr.bf16.mxu0 %v996_v24  ;;  %1232 = vmatprep.subr.bf16.mxu1 %v998_v36  ;;  %v856_v24 = vld [vmem:[#allocation3 + $0x228] sm:$0xff]  ;;  %v858_v36 = vld [vmem:[#allocation3 + $0x238] sm:$0xff] }
 0x41c   :  { %1151 = vmatpush1.bf16.msra.mxu0 %v995_v37  ;;  %1233 = vmatpush1.bf16.msra.mxu1 %v997_v25  ;;  %v855_v37 = vld [vmem:[#allocation3 + $0x220] sm:$0xff]  ;;  %v857_v25 = vld [vmem:[#allocation3 + $0x230] sm:$0xff] }
 0x41d   :  { %1152 = vmatprep.subr.bf16.mxu0 %v1004_v26  ;;  %1234 = vmatprep.subr.bf16.mxu1 %v1006_v40  ;;  %v864_v26 = vld [vmem:[#allocation3 + $0x268] sm:$0xff]  ;;  %v866_v40 = vld [vmem:[#allocation3 + $0x278] sm:$0xff] }
 0x420   :  { %1153 = vmatpush1.bf16.msra.mxu0 %v1003_v45  ;;  %1235 = vmatpush1.bf16.msra.mxu1 %v1005_v46  ;;  %v863_v45 = vld [vmem:[#allocation3 + $0x260] sm:$0xff]  ;;  %v865_v46 = vld [vmem:[#allocation3 + $0x270] sm:$0xff] }
 0x421   :  { %1154 = vmatprep.subr.bf16.mxu0 %v1012_v47  ;;  %1236 = vmatprep.subr.bf16.mxu1 %v1014_v30  ;;  %v872_v47 = vld [vmem:[#allocation3 + $0x2a8] sm:$0xff]  ;;  %v874_v30 = vld [vmem:[#allocation3 + $0x2b8] sm:$0xff] }
 0x424   :  { %1155 = vmatpush1.bf16.msra.mxu0 %v1011_v48  ;;  %1237 = vmatpush1.bf16.msra.mxu1 %v1013_v49  ;;  %v871_v48 = vld [vmem:[#allocation3 + $0x2a0] sm:$0xff]  ;;  %v873_v49 = vld [vmem:[#allocation3 + $0x2b0] sm:$0xff] }
 0x425   :  { %1156 = vmatprep.subr.bf16.mxu0 %v1020_v50  ;;  %1238 = vmatprep.subr.bf16.mxu1 %v1022_v51  ;;  %v880_v50 = vld [vmem:[#allocation3 + $0x2e8] sm:$0xff]  ;;  %v882_v51 = vld [vmem:[#allocation3 + $0x2f8] sm:$0xff] }
 0x428   :  { %1157 = vmatpush1.bf16.msra.mxu0 %v1019_v52  ;;  %1239 = vmatpush1.bf16.msra.mxu1 %v1021_v53  ;;  %v879_v52 = vld [vmem:[#allocation3 + $0x2e0] sm:$0xff]  ;;  %v881_v53 = vld [vmem:[#allocation3 + $0x2f0] sm:$0xff] }
 0x429   :  { %1158 = vmatprep.subr.bf16.mxu0 %v1028_v54  ;;  %1240 = vmatprep.subr.bf16.mxu1 %v1030_v56  ;;  %v888_v54 = vld [vmem:[#allocation3 + $0x328] sm:$0xff]  ;;  %v890_v56 = vld [vmem:[#allocation3 + $0x338] sm:$0xff] }
 0x42c   :  { %1159 = vmatpush1.bf16.msra.mxu0 %v1027_v57  ;;  %1241 = vmatpush1.bf16.msra.mxu1 %v1029_v58  ;;  %v887_v57 = vld [vmem:[#allocation3 + $0x320] sm:$0xff]  ;;  %v889_v58 = vld [vmem:[#allocation3 + $0x330] sm:$0xff] }
 0x42d   :  { %1160 = vmatprep.subr.bf16.mxu0 %v1036_v59  ;;  %1242 = vmatprep.subr.bf16.mxu1 %v1038_v38  ;;  %v896_v59 = vld [vmem:[#allocation3 + $0x368] sm:$0xff]  ;;  %v898_v38 = vld [vmem:[#allocation3 + $0x378] sm:$0xff] }
 0x430   :  { %1161 = vmatpush1.bf16.msra.mxu0 %v1035_v61  ;;  %1243 = vmatpush1.bf16.msra.mxu1 %v1037_v62  ;;  %v895_v61 = vld [vmem:[#allocation3 + $0x360] sm:$0xff]  ;;  %v897_v62 = vld [vmem:[#allocation3 + $0x370] sm:$0xff] }
 0x431   :  { %1253 = vmatprep.subr.bf16.mxu0 %v792_v63  ;;  %1335 = vmatprep.subr.bf16.mxu1 %v794_v42  ;;  %v904_v63 = vld [vmem:[#allocation3 + $0x3a8] sm:$0xff]  ;;  %v906_v42 = vld [vmem:[#allocation3 + $0x3b8] sm:$0xff] }
 0x433   :  { %1163 = vmatmul.mubr.bf16.vlgmr.msra.gmra.mrb[8].mxu0 %v2570_v0  ;;  %1245 = vmatmul.mubr.bf16.vlgmr.msra.gmra.mrb[8].mxu1 %v2570_v0 }
 0x434   :  { %1254 = vmatpush1.bf16.msra.mxu0 %v791_v1  ;;  %1336 = vmatpush1.bf16.msra.mxu1 %v793_v2  ;;  %v903_v1 = vld [vmem:[#allocation3 + $0x3a0] sm:$0xff]  ;;  %v905_v2 = vld [vmem:[#allocation3 + $0x3b0] sm:$0xff] }
 0x435   :  { %1255 = vmatprep.subr.bf16.mxu0 %v800_v3  ;;  %1337 = vmatprep.subr.bf16.mxu1 %v802_v4  ;;  %v912_v3 = vld [vmem:[#allocation3 + $0x3e8] sm:$0xff]  ;;  %v914_v4 = vld [vmem:[#allocation3 + $0x3f8] sm:$0xff] }
 0x436   :  { %1285 = vmatprep.mubr.bf16.mxu0 %v2552_v44  ;;  %1367 = vmatprep.mubr.bf16.mxu1 %v2552_v44  ;;  %v823_v44 = vld [vmem:[#allocation3 + $0x120] sm:$0xff] }
 0x438   :  { %1256 = vmatpush1.bf16.msra.mxu0 %v799_v5  ;;  %1338 = vmatpush1.bf16.msra.mxu1 %v801_v6  ;;  %v911_v5 = vld [vmem:[#allocation3 + $0x3e0] sm:$0xff]  ;;  %v913_v6 = vld [vmem:[#allocation3 + $0x3f0] sm:$0xff] }
 0x439   :  { %1257 = vmatprep.subr.bf16.mxu0 %v808_v39  ;;  %1339 = vmatprep.subr.bf16.mxu1 %v810_v7  ;;  %v920_v39 = vld [vmem:[#allocation3 + $0x428] sm:$0xff]  ;;  %v922_v7 = vld [vmem:[#allocation3 + $0x438] sm:$0xff] }
 0x43c   :  { %1258 = vmatpush1.bf16.msra.mxu0 %v807_v8  ;;  %1340 = vmatpush1.bf16.msra.mxu1 %v809_v9  ;;  %v919_v8 = vld [vmem:[#allocation3 + $0x420] sm:$0xff]  ;;  %v921_v9 = vld [vmem:[#allocation3 + $0x430] sm:$0xff] }
 0x43d   :  { %1259 = vmatprep.subr.bf16.mxu0 %v816_v10  ;;  %1341 = vmatprep.subr.bf16.mxu1 %v818_v11  ;;  %v928_v10 = vld [vmem:[#allocation3 + $0x468] sm:$0xff]  ;;  %v930_v11 = vld [vmem:[#allocation3 + $0x478] sm:$0xff] }
 0x440   :  { %1260 = vmatpush1.bf16.msra.mxu0 %v815_v12  ;;  %1342 = vmatpush1.bf16.msra.mxu1 %v817_v13  ;;  %v927_v12 = vld [vmem:[#allocation3 + $0x460] sm:$0xff]  ;;  %v929_v13 = vld [vmem:[#allocation3 + $0x470] sm:$0xff] }
 0x441   :  { %1261 = vmatprep.subr.bf16.mxu0 %v824_v14  ;;  %1343 = vmatprep.subr.bf16.mxu1 %v826_v15  ;;  %v936_v14 = vld [vmem:[#allocation3 + $0x4a8] sm:$0xff]  ;;  %v938_v15 = vld [vmem:[#allocation3 + $0x4b8] sm:$0xff] }
 0x444   :  { %1262 = vmatpush1.bf16.msra.mxu0 %v823_v44  ;;  %1344 = vmatpush1.bf16.msra.mxu1 %v825_v16  ;;  %v935_v44 = vld [vmem:[#allocation3 + $0x4a0] sm:$0xff]  ;;  %v937_v16 = vld [vmem:[#allocation3 + $0x4b0] sm:$0xff] }
 0x445   :  { %1263 = vmatprep.subr.bf16.mxu0 %v832_v17  ;;  %1345 = vmatprep.subr.bf16.mxu1 %v834_v18  ;;  %v944_v17 = vld [vmem:[#allocation3 + $0x4e8] sm:$0xff]  ;;  %v943_v18 = vld [vmem:[#allocation3 + $0x4e0] sm:$0xff] }
 0x448   :  { %1264 = vmatpush1.bf16.msra.mxu0 %v831_v19  ;;  %1346 = vmatpush1.bf16.msra.mxu1 %v833_v20  ;;  %v945_v19 = vld [vmem:[#allocation3 + $0x4f0] sm:$0xff]  ;;  %v952_v20 = vld [vmem:[#allocation3 + $0x528] sm:$0xff] }
 0x449   :  { %1265 = vmatprep.subr.bf16.mxu0 %v840_v21  ;;  %1347 = vmatprep.subr.bf16.mxu1 %v842_v22  ;;  %v954_v21 = vld [vmem:[#allocation3 + $0x538] sm:$0xff]  ;;  %v953_v22 = vld [vmem:[#allocation3 + $0x530] sm:$0xff] }
 0x44c   :  { %1266 = vmatpush1.bf16.msra.mxu0 %v839_v27  ;;  %1348 = vmatpush1.bf16.msra.mxu1 %v841_v23  ;;  %v960_v27 = vld [vmem:[#allocation3 + $0x568] sm:$0xff]  ;;  %v962_v23 = vld [vmem:[#allocation3 + $0x578] sm:$0xff] }
 0x44d   :  { %1267 = vmatprep.subr.bf16.mxu0 %v848_v28  ;;  %1349 = vmatprep.subr.bf16.mxu1 %v850_v29  ;;  %v959_v28 = vld [vmem:[#allocation3 + $0x560] sm:$0xff]  ;;  %v961_v29 = vld [vmem:[#allocation3 + $0x570] sm:$0xff] }
 0x450   :  { %1268 = vmatpush1.bf16.msra.mxu0 %v847_v31  ;;  %1350 = vmatpush1.bf16.msra.mxu1 %v849_v34  ;;  %v968_v31 = vld [vmem:[#allocation3 + $0x5a8] sm:$0xff]  ;;  %v970_v34 = vld [vmem:[#allocation3 + $0x5b8] sm:$0xff] }
 0x451   :  { %1269 = vmatprep.subr.bf16.mxu0 %v856_v24  ;;  %1351 = vmatprep.subr.bf16.mxu1 %v858_v36  ;;  %v967_v24 = vld [vmem:[#allocation3 + $0x5a0] sm:$0xff]  ;;  %v969_v36 = vld [vmem:[#allocation3 + $0x5b0] sm:$0xff] }
 0x454   :  { %1270 = vmatpush1.bf16.msra.mxu0 %v855_v37  ;;  %1352 = vmatpush1.bf16.msra.mxu1 %v857_v25  ;;  %v976_v37 = vld [vmem:[#allocation3 + $0x5e8] sm:$0xff]  ;;  %v978_v25 = vld [vmem:[#allocation3 + $0x5f8] sm:$0xff] }
 0x455   :  { %1271 = vmatprep.subr.bf16.mxu0 %v864_v26  ;;  %1353 = vmatprep.subr.bf16.mxu1 %v866_v40  ;;  %v975_v26 = vld [vmem:[#allocation3 + $0x5e0] sm:$0xff]  ;;  %v977_v40 = vld [vmem:[#allocation3 + $0x5f0] sm:$0xff] }
 0x458   :  { %1272 = vmatpush1.bf16.msra.mxu0 %v863_v45  ;;  %1354 = vmatpush1.bf16.msra.mxu1 %v865_v46  ;;  %v984_v45 = vld [vmem:[#allocation3 + $0x628] sm:$0xff]  ;;  %v986_v46 = vld [vmem:[#allocation3 + $0x638] sm:$0xff] }
 0x459   :  { %1273 = vmatprep.subr.bf16.mxu0 %v872_v47  ;;  %1355 = vmatprep.subr.bf16.mxu1 %v874_v30  ;;  %v983_v47 = vld [vmem:[#allocation3 + $0x620] sm:$0xff]  ;;  %v985_v30 = vld [vmem:[#allocation3 + $0x630] sm:$0xff] }
 0x45c   :  { %1274 = vmatpush1.bf16.msra.mxu0 %v871_v48  ;;  %1356 = vmatpush1.bf16.msra.mxu1 %v873_v49  ;;  %v992_v48 = vld [vmem:[#allocation3 + $0x668] sm:$0xff]  ;;  %v994_v49 = vld [vmem:[#allocation3 + $0x678] sm:$0xff] }
 0x45d   :  { %1275 = vmatprep.subr.bf16.mxu0 %v880_v50  ;;  %1357 = vmatprep.subr.bf16.mxu1 %v882_v51  ;;  %v991_v50 = vld [vmem:[#allocation3 + $0x660] sm:$0xff]  ;;  %v993_v51 = vld [vmem:[#allocation3 + $0x670] sm:$0xff] }
 0x460   :  { %1276 = vmatpush1.bf16.msra.mxu0 %v879_v52  ;;  %1358 = vmatpush1.bf16.msra.mxu1 %v881_v53  ;;  %v1000_v52 = vld [vmem:[#allocation3 + $0x6a8] sm:$0xff]  ;;  %v1002_v53 = vld [vmem:[#allocation3 + $0x6b8] sm:$0xff] }
 0x461   :  { %1277 = vmatprep.subr.bf16.mxu0 %v888_v54  ;;  %1359 = vmatprep.subr.bf16.mxu1 %v890_v56  ;;  %v999_v54 = vld [vmem:[#allocation3 + $0x6a0] sm:$0xff]  ;;  %v1001_v56 = vld [vmem:[#allocation3 + $0x6b0] sm:$0xff] }
 0x464   :  { %1278 = vmatpush1.bf16.msra.mxu0 %v887_v57  ;;  %1360 = vmatpush1.bf16.msra.mxu1 %v889_v58  ;;  %v1008_v57 = vld [vmem:[#allocation3 + $0x6e8] sm:$0xff]  ;;  %v1010_v58 = vld [vmem:[#allocation3 + $0x6f8] sm:$0xff] }
 0x465   :  { %1279 = vmatprep.subr.bf16.mxu0 %v896_v59  ;;  %1361 = vmatprep.subr.bf16.mxu1 %v898_v38  ;;  %v1007_v59 = vld [vmem:[#allocation3 + $0x6e0] sm:$0xff]  ;;  %v1009_v38 = vld [vmem:[#allocation3 + $0x6f0] sm:$0xff] }
 0x468   :  { %1280 = vmatpush1.bf16.msra.mxu0 %v895_v61  ;;  %1362 = vmatpush1.bf16.msra.mxu1 %v897_v62  ;;  %v1016_v61 = vld [vmem:[#allocation3 + $0x728] sm:$0xff]  ;;  %v1018_v62 = vld [vmem:[#allocation3 + $0x738] sm:$0xff] }
 0x469   :  { %1281 = vmatprep.subr.bf16.mxu0 %v904_v63  ;;  %1363 = vmatprep.subr.bf16.mxu1 %v906_v42  ;;  %v1015_v63 = vld [vmem:[#allocation3 + $0x720] sm:$0xff]  ;;  %v1017_v42 = vld [vmem:[#allocation3 + $0x730] sm:$0xff] }
 0x46c   :  { %1282 = vmatpush1.bf16.msra.mxu0 %v903_v1  ;;  %1364 = vmatpush1.bf16.msra.mxu1 %v905_v2  ;;  %v1024_v1 = vld [vmem:[#allocation3 + $0x768] sm:$0xff]  ;;  %v1026_v2 = vld [vmem:[#allocation3 + $0x778] sm:$0xff] }
 0x46d   :  { %1283 = vmatprep.subr.bf16.mxu0 %v912_v3  ;;  %1365 = vmatprep.subr.bf16.mxu1 %v914_v4  ;;  %v1023_v3 = vld [vmem:[#allocation3 + $0x760] sm:$0xff]  ;;  %v1025_v4 = vld [vmem:[#allocation3 + $0x770] sm:$0xff] }
 0x470   :  { %1284 = vmatpush1.bf16.msra.mxu0 %v911_v5  ;;  %1366 = vmatpush1.bf16.msra.mxu1 %v913_v6  ;;  %v1032_v5 = vld [vmem:[#allocation3 + $0x7a8] sm:$0xff]  ;;  %v1034_v6 = vld [vmem:[#allocation3 + $0x7b8] sm:$0xff] }
 0x471   :  { %1294 = vmatprep.subr.bf16.mxu0 %v920_v39  ;;  %1376 = vmatprep.subr.bf16.mxu1 %v922_v7  ;;  %v1031_v39 = vld [vmem:[#allocation3 + $0x7a0] sm:$0xff]  ;;  %v1033_v7 = vld [vmem:[#allocation3 + $0x7b0] sm:$0xff] }
 0x473   :  { %1286 = vmatmul.mubr.bf16.vlgmr.msra.gmra.mrb[12].mxu0 %v2558_v55  ;;  %1368 = vmatmul.mubr.bf16.vlgmr.msra.gmra.mrb[12].mxu1 %v2558_v55  ;;  %v946_v55 = vld [vmem:[#allocation3 + $0x4f8] sm:$0xff] }
 0x474   :  { %1295 = vmatpush1.bf16.msra.mxu0 %v919_v8  ;;  %1377 = vmatpush1.bf16.msra.mxu1 %v921_v9  ;;  %v1040_v8 = vld [vmem:[#allocation3 + $0x7e8] sm:$0xff]  ;;  %v1042_v9 = vld [vmem:[#allocation3 + $0x7f8] sm:$0xff] }
 0x475   :  { %1296 = vmatprep.subr.bf16.mxu0 %v928_v10  ;;  %1378 = vmatprep.subr.bf16.mxu1 %v930_v11  ;;  %v1039_v10 = vld [vmem:[#allocation3 + $0x7e0] sm:$0xff]  ;;  %v1041_v11 = vld [vmem:[#allocation3 + $0x7f0] sm:$0xff] }
 0x476   :  { %1326 = vmatprep.mubr.bf16.mxu0 %v2562_v60  ;;  %1408 = vmatprep.mubr.bf16.mxu1 %v2562_v60  ;;  %v951_v60 = vld [vmem:[#allocation3 + $0x520] sm:$0xff] }
 0x478   :  { %1297 = vmatpush1.bf16.msra.mxu0 %v927_v12  ;;  %1379 = vmatpush1.bf16.msra.mxu1 %v929_v13  ;;  %v2582_v12 = vld [vmem:[#allocation13] ss:$4 sm:$0xff] }
 0x479   :  { %1298 = vmatprep.subr.bf16.mxu0 %v936_v14  ;;  %1380 = vmatprep.subr.bf16.mxu1 %v938_v15  ;;  %v1052_v13 = vrot.slane %v2582_v12, %v2513_v33  ;;  %v1060_v14 = vrot.slane %v2582_v12, %v2529_v41  ;;  %v1056_v15 = vrot.slane %v2582_v12, %v2516_v35 }
 0x47c   :  { %1299 = vmatpush1.bf16.msra.mxu0 %v935_v44  ;;  %1381 = vmatpush1.bf16.msra.mxu1 %v937_v16  ;;  %v1064_v44 = vrot.slane %v2582_v12, %v2532_v43 }
 0x47d   :  { %1300 = vmatprep.subr.bf16.mxu0 %v944_v17  ;;  %1382 = vmatprep.subr.bf16.mxu1 %v946_v55 }
 0x480   :  { %1301 = vmatpush1.bf16.msra.mxu0 %v943_v18  ;;  %1383 = vmatpush1.bf16.msra.mxu1 %v945_v19 }
 0x481   :  { %1302 = vmatprep.subr.bf16.mxu0 %v952_v20  ;;  %1384 = vmatprep.subr.bf16.mxu1 %v954_v21 }
 0x484   :  { %1303 = vmatpush1.bf16.msra.mxu0 %v951_v60  ;;  %1385 = vmatpush1.bf16.msra.mxu1 %v953_v22 }
 0x485   :  { %1304 = vmatprep.subr.bf16.mxu0 %v960_v27  ;;  %1386 = vmatprep.subr.bf16.mxu1 %v962_v23 }
 0x488   :  { %1305 = vmatpush1.bf16.msra.mxu0 %v959_v28  ;;  %1387 = vmatpush1.bf16.msra.mxu1 %v961_v29 }
 0x489   :  { %1306 = vmatprep.subr.bf16.mxu0 %v968_v31  ;;  %1388 = vmatprep.subr.bf16.mxu1 %v970_v34 }
 0x48c   :  { %1307 = vmatpush1.bf16.msra.mxu0 %v967_v24  ;;  %1389 = vmatpush1.bf16.msra.mxu1 %v969_v36 }
 0x48d   :  { %1308 = vmatprep.subr.bf16.mxu0 %v976_v37  ;;  %1390 = vmatprep.subr.bf16.mxu1 %v978_v25 }
 0x490   :  { %1309 = vmatpush1.bf16.msra.mxu0 %v975_v26  ;;  %1391 = vmatpush1.bf16.msra.mxu1 %v977_v40 }
 0x491   :  { %1310 = vmatprep.subr.bf16.mxu0 %v984_v45  ;;  %1392 = vmatprep.subr.bf16.mxu1 %v986_v46 }
 0x494   :  { %1311 = vmatpush1.bf16.msra.mxu0 %v983_v47  ;;  %1393 = vmatpush1.bf16.msra.mxu1 %v985_v30 }
 0x495   :  { %1312 = vmatprep.subr.bf16.mxu0 %v992_v48  ;;  %1394 = vmatprep.subr.bf16.mxu1 %v994_v49 }
 0x498   :  { %1313 = vmatpush1.bf16.msra.mxu0 %v991_v50  ;;  %1395 = vmatpush1.bf16.msra.mxu1 %v993_v51 }
 0x499   :  { %1314 = vmatprep.subr.bf16.mxu0 %v1000_v52  ;;  %1396 = vmatprep.subr.bf16.mxu1 %v1002_v53 }
 0x49c   :  { %1315 = vmatpush1.bf16.msra.mxu0 %v999_v54  ;;  %1397 = vmatpush1.bf16.msra.mxu1 %v1001_v56 }
 0x49d   :  { %1316 = vmatprep.subr.bf16.mxu0 %v1008_v57  ;;  %1398 = vmatprep.subr.bf16.mxu1 %v1010_v58 }
 0x4a0   :  { %1317 = vmatpush1.bf16.msra.mxu0 %v1007_v59  ;;  %1399 = vmatpush1.bf16.msra.mxu1 %v1009_v38 }
 0x4a1   :  { %1318 = vmatprep.subr.bf16.mxu0 %v1016_v61  ;;  %1400 = vmatprep.subr.bf16.mxu1 %v1018_v62 }
 0x4a4   :  { %1319 = vmatpush1.bf16.msra.mxu0 %v1015_v63  ;;  %1401 = vmatpush1.bf16.msra.mxu1 %v1017_v42 }
 0x4a5   :  { %1320 = vmatprep.subr.bf16.mxu0 %v1024_v1  ;;  %1402 = vmatprep.subr.bf16.mxu1 %v1026_v2 }
 0x4a8   :  { %1321 = vmatpush1.bf16.msra.mxu0 %v1023_v3  ;;  %1403 = vmatpush1.bf16.msra.mxu1 %v1025_v4 }
 0x4a9   :  { %1322 = vmatprep.subr.bf16.mxu0 %v1032_v5  ;;  %1404 = vmatprep.subr.bf16.mxu1 %v1034_v6 }
 0x4ac   :  { %1323 = vmatpush1.bf16.msra.mxu0 %v1031_v39  ;;  %1405 = vmatpush1.bf16.msra.mxu1 %v1033_v7 }
 0x4ad   :  { %1324 = vmatprep.subr.bf16.mxu0 %v1040_v8  ;;  %1406 = vmatprep.subr.bf16.mxu1 %v1042_v9 }
 0x4b0   :  { %1325 = vmatpush1.bf16.msra.mxu0 %v1039_v10  ;;  %1407 = vmatpush1.bf16.msra.mxu1 %v1041_v11 }
 0x4b3   :  { %1327 = vmatmul.mubr.bf16.vlgmr.msra.gmra.mrb[12].mxu0 %v2570_v0  ;;  %1409 = vmatmul.mubr.bf16.vlgmr.msra.gmra.mrb[12].mxu1 %v2570_v0 }
 0x506   :  { %v1164_v16 = vpop.f32.mrb[8].mxu0  ;;  %v1246_v17 = vpop.f32.mrb[8].mxu1 }
 0x507   :  { %v2092_v55 = vadd.f32 %v1164_v16, %v1052_v13  ;;  %v2094_v18 = vadd.f32 %v1246_v17, %v1060_v14  ;;  %v1166_v19 = vpop.f32.mrb[9].mxu0  ;;  %v1248_v0 = vpop.f32.mrb[9].mxu1 }
 0x508   :  { %v2093_v20 = vadd.f32 %v1166_v19, %v1056_v15  ;;  %v2095_v21 = vadd.f32 %v1248_v0, %v1064_v44  ;;  %v1168_v60 = vpop.f32.mrb[10].mxu0  ;;  %v1250_v22 = vpop.f32.mrb[10].mxu1 }
 0x509   :  { %v1417_v27 = vrot.slane %v2092_v55, 4  ;;  %v1429_v23 = vrot.slane %v2094_v18, 4  ;;  %v1169_v28 = vpop.f32.mrb[11].mxu0  ;;  %v1251_v29 = vpop.f32.mrb[11].mxu1 }
 0x50a   :  { %v1423_v31 = vrot.slane %v2093_v20, 4  ;;  %v1435_v34 = vrot.slane %v2095_v21, 4 }
 0x50b   :  { %v1418_v24 = vadd.f32 %v2092_v55, %v1417_v27  ;;  %v1430_v36 = vadd.f32 %v2094_v18, %v1429_v23 }
 0x50c   :  { %v1424_v37 = vadd.f32 %v2093_v20, %v1423_v31  ;;  %v1436_v25 = vadd.f32 %v2095_v21, %v1435_v34 }
 0x50d   :  { %v1419_v26 = vrot.slane %v1418_v24, 2  ;;  %v1431_v40 = vrot.slane %v1430_v36, 2 }
 0x50e   :  { %v1425_v45 = vrot.slane %v1424_v37, 2  ;;  %v1437_v46 = vrot.slane %v1436_v25, 2 }
 0x50f   :  { %v1420_v47 = vadd.f32 %v1419_v26, %v1418_v24  ;;  %v1432_v30 = vadd.f32 %v1431_v40, %v1430_v36 }
 0x510   :  { %v1426_v48 = vadd.f32 %v1425_v45, %v1424_v37  ;;  %v1438_v49 = vadd.f32 %v1437_v46, %v1436_v25  ;;  %v2592_v45 = vld [vmem:[#allocation13 + $0x1] ss:$4 sm:$0xff]  ;;  %v2594_v46 = vld [vmem:[#allocation13 + $0x2] ss:$4 sm:$0xff] }
 0x511   :  { %v1421_v50 = vrot.slane %v1420_v47, 1  ;;  %v1433_v51 = vrot.slane %v1432_v30, 1 }
 0x512   :  { %v1427_v52 = vrot.slane %v1426_v48, 1  ;;  %v1439_v53 = vrot.slane %v1438_v49, 1 }
 0x513   :  { %v1422_v54 = vadd.f32 %v1421_v50, %v1420_v47  ;;  %v1434_v56 = vadd.f32 %v1433_v51, %v1432_v30  ;;  %v1575_v47 = vrot.slane %v2592_v45, %v2513_v33  ;;  %v1626_v51 = vrot.slane %v2594_v46, %v2513_v33 }
 0x514   :  { %v1428_v57 = vadd.f32 %v1427_v52, %v1426_v48  ;;  %v1440_v58 = vadd.f32 %v1439_v53, %v1438_v49  ;;  %v1583_v48 = vrot.slane %v2592_v45, %v2529_v41  ;;  %v1579_v52 = vrot.slane %v2592_v45, %v2516_v35 }
 0x515   :  { %v1465_v59 = vmul.f32 0.125, %v1422_v54  ;;  %v1467_v38 = vmul.f32 0.125, %v1434_v56  ;;  %v1634_v56 = vrot.slane %v2594_v46, %v2529_v41  ;;  %v1638_v33 = vrot.slane %v2594_v46, %v2532_v43 }
 0x516   :  { %v1466_v61 = vmul.f32 0.125, %v1428_v57  ;;  %v1468_v62 = vmul.f32 0.125, %v1440_v58  ;;  %v1587_v57 = vrot.slane %v2592_v45, %v2532_v43 }
 0x517   :  { %v1473_v63 = vsub.f32 %v2092_v55, %v1465_v59  ;;  %v1475_v42 = vsub.f32 %v2094_v18, %v1467_v38 }
 0x518   :  { %v1474_v1 = vsub.f32 %v2093_v20, %v1466_v61  ;;  %v1476_v2 = vsub.f32 %v2095_v21, %v1468_v62  ;;  %v1630_v61 = vrot.slane %v2594_v46, %v2516_v35 }
 0x519   :  { %v1481_v3 = vmul.f32 %v1473_v63, %v1473_v63  ;;  %v1483_v4 = vmul.f32 %v1475_v42, %v1475_v42 }
 0x51a   :  { %v1482_v5 = vmul.f32 %v1474_v1, %v1474_v1  ;;  %v1484_v6 = vmul.f32 %v1476_v2, %v1476_v2 }
 0x51b   :  { %v1489_v39 = vrot.slane %v1481_v3, 4  ;;  %v1501_v7 = vrot.slane %v1483_v4, 4 }
 0x51c   :  { %v1495_v8 = vrot.slane %v1482_v5, 4  ;;  %v1507_v9 = vrot.slane %v1484_v6, 4 }
 0x51d   :  { %v1490_v10 = vadd.f32 %v1489_v39, %v1481_v3  ;;  %v1502_v11 = vadd.f32 %v1501_v7, %v1483_v4 }
 0x51e   :  { %v1496_v13 = vadd.f32 %v1495_v8, %v1482_v5  ;;  %v1508_v14 = vadd.f32 %v1507_v9, %v1484_v6 }
 0x51f   :  { %v1491_v15 = vrot.slane %v1490_v10, 2  ;;  %v1503_v44 = vrot.slane %v1502_v11, 2 }
 0x520   :  { %v1497_v16 = vrot.slane %v1496_v13, 2  ;;  %v1509_v17 = vrot.slane %v1508_v14, 2 }
 0x521   :  { %v1492_v55 = vadd.f32 %v1491_v15, %v1490_v10  ;;  %v1504_v18 = vadd.f32 %v1503_v44, %v1502_v11  ;;  %v2621_v10 = vsub.s32 4, %v2510_v32  ;;  %v2624_v11 = vsub.s32 6, %v2510_v32 }
 0x522   :  { %v1498_v19 = vadd.f32 %v1497_v16, %v1496_v13  ;;  %v1510_v0 = vadd.f32 %v1509_v17, %v1508_v14  ;;  %v2627_v13 = vsub.s32 5, %v2510_v32  ;;  %v2630_v14 = vsub.s32 7, %v2510_v32 }
 0x523   :  { %v1493_v20 = vrot.slane %v1492_v55, 1  ;;  %v1505_v21 = vrot.slane %v1504_v18, 1  ;;  %v1068_v15 = vrot.slane %v2582_v12, %v2621_v10  ;;  %v1076_v44 = vrot.slane %v2582_v12, %v2624_v11 }
 0x524   :  { %v1499_v60 = vrot.slane %v1498_v19, 1  ;;  %v1511_v22 = vrot.slane %v1510_v0, 1  ;;  %v1072_v16 = vrot.slane %v2582_v12, %v2627_v13  ;;  %v1080_v17 = vrot.slane %v2582_v12, %v2630_v14 }
 0x525   :  { %v1494_v27 = vadd.f32 %v1493_v20, %v1492_v55  ;;  %v1506_v23 = vadd.f32 %v1505_v21, %v1504_v18 }
 0x526   :  { %v1500_v28 = vadd.f32 %v1499_v60, %v1498_v19  ;;  %v1512_v29 = vadd.f32 %v1511_v22, %v1510_v0 }
 0x527   :  { %v1537_v31 = vmul.f32 0.125, %v1494_v27  ;;  %v1539_v34 = vmul.f32 0.125, %v1506_v23 }
 0x528   :  { %v1538_v24 = vmul.f32 0.125, %v1500_v28  ;;  %v1540_v36 = vmul.f32 0.125, %v1512_v29 }
 0x529   :  { %v1545_v37 = vadd.f32 0.8, %v1537_v31  ;;  %v1547_v25 = vadd.f32 0.8, %v1539_v34 }
 0x52a   :  { %v1546_v26 = vadd.f32 0.8, %v1538_v24  ;;  %v1548_v40 = vadd.f32 0.8, %v1540_v36 }
 0x52b   :  { %2177 = vrsqrt.f32 %v1545_v37 }
 0x52c   :  { %2179 = vrsqrt.f32 %v1547_v25 }
 0x52d   :  { %2181 = vrsqrt.f32 %v1546_v26 }
 0x52e   :  { %2183 = vrsqrt.f32 %v1548_v40 }
 0x535   :  { %v2178_v30 = vpop.eup %2177 }
 0x536   :  { %v2180_v49 = vpop.eup %2179  ;;  %v1561_v50 = vmul.f32 %v2178_v30, %v1473_v63 }
 0x537   :  { %v2182_v53 = vpop.eup %2181  ;;  %v1563_v54 = vmul.f32 %v2180_v49, %v1475_v42 }
 0x538   :  { %v2184_v58 = vpop.eup %2183  ;;  %v1612_v59 = vmul.f32 %v1575_v47, %v1561_v50  ;;  %v1562_v38 = vmul.f32 %v2182_v53, %v1474_v1 }
 0x539   :  { %v1614_v62 = vmul.f32 %v1583_v48, %v1563_v54  ;;  %v1564_v63 = vmul.f32 %v2184_v58, %v1476_v2 }
 0x53a   :  { %v1663_v3 = vadd.f32 %v1626_v51, %v1612_v59  ;;  %v1613_v4 = vmul.f32 %v1579_v52, %v1562_v38 }
 0x53b   :  { %v1665_v42 = vadd.f32 %v1634_v56, %v1614_v62  ;;  %v1615_v5 = vmul.f32 %v1587_v57, %v1564_v63 }
 0x53c   :  { %vm1671_vm9 = vcmp.gt.f32.partialorder %v1663_v3, 0.0  ;;  %v1679_v41 = vmul.f32 0.2, %v1663_v3  ;;  %v1664_v6 = vadd.f32 %v1630_v61, %v1613_v4 }
 0x53d   :  { %vm1673_vm10 = vcmp.gt.f32.partialorder %v1665_v42, 0.0  ;;  %v1681_v39 = vmul.f32 0.2, %v1665_v42  ;;  %v1666_v7 = vadd.f32 %v1638_v33, %v1615_v5 }
 0x53e   :  { %v2612_v8 = vsel %vm1671_vm9, %v1663_v3, %v1679_v41  ;;  %vm1672_vm11 = vcmp.gt.f32.partialorder %v1664_v6, 0.0  ;;  %v1680_v1 = vmul.f32 0.2, %v1664_v6 }
 0x53f   :  { %v2614_v35 = vsel %vm1673_vm10, %v1665_v42, %v1681_v39  ;;  %vm1674_vm12 = vcmp.gt.f32.partialorder %v1666_v7, 0.0  ;;  %v1682_v2 = vmul.f32 0.2, %v1666_v7 }
 0x540   :  { %v2616_v9 = vsel %vm1672_vm11, %v1664_v6, %v1680_v1 }
 0x541   :  { %v2618_v43 = vsel %vm1674_vm12, %v1666_v7, %v1682_v2 }
 0x586   :  { %v1328_v55 = vpop.f32.mrb[12].mxu0  ;;  %v1410_v18 = vpop.f32.mrb[12].mxu1 }
 0x587   :  { %v2096_v19 = vadd.f32 %v1328_v55, %v1068_v15  ;;  %v2098_v0 = vadd.f32 %v1410_v18, %v1076_v44  ;;  %v1330_v20 = vpop.f32.mrb[13].mxu0  ;;  %v1412_v21 = vpop.f32.mrb[13].mxu1 }
 0x588   :  { %v2097_v32 = vadd.f32 %v1330_v20, %v1072_v16  ;;  %v2099_v60 = vadd.f32 %v1412_v21, %v1080_v17  ;;  %v1332_v22 = vpop.f32.mrb[14].mxu0  ;;  %v1414_v27 = vpop.f32.mrb[14].mxu1 }
 0x589   :  { %v1441_v23 = vrot.slane %v2096_v19, 4  ;;  %v1453_v28 = vrot.slane %v2098_v0, 4  ;;  %v1333_v29 = vpop.f32.mrb[15].mxu0  ;;  %v1415_v31 = vpop.f32.mrb[15].mxu1 }
 0x58a   :  { %v1447_v34 = vrot.slane %v2097_v32, 4  ;;  %v1459_v24 = vrot.slane %v2099_v60, 4 }
 0x58b   :  { %v1442_v36 = vadd.f32 %v2096_v19, %v1441_v23  ;;  %v1454_v37 = vadd.f32 %v2098_v0, %v1453_v28 }
 0x58c   :  { %v1448_v25 = vadd.f32 %v2097_v32, %v1447_v34  ;;  %v1460_v12 = vadd.f32 %v2099_v60, %v1459_v24 }
 0x58d   :  { %v1443_v26 = vrot.slane %v1442_v36, 2  ;;  %v1455_v40 = vrot.slane %v1454_v37, 2 }
 0x58e   :  { %v1449_v47 = vrot.slane %v1448_v25, 2  ;;  %v1461_v30 = vrot.slane %v1460_v12, 2 }
 0x58f   :  { %v1444_v48 = vadd.f32 %v1443_v26, %v1442_v36  ;;  %v1456_v49 = vadd.f32 %v1455_v40, %v1454_v37 }
 0x590   :  { %v1450_v50 = vadd.f32 %v1449_v47, %v1448_v25  ;;  %v1462_v51 = vadd.f32 %v1461_v30, %v1460_v12 }
 0x591   :  { %v1445_v52 = vrot.slane %v1444_v48, 1  ;;  %v1457_v53 = vrot.slane %v1456_v49, 1 }
 0x592   :  { %v1451_v54 = vrot.slane %v1450_v50, 1  ;;  %v1463_v56 = vrot.slane %v1462_v51, 1 }
 0x593   :  { %v1446_v57 = vadd.f32 %v1445_v52, %v1444_v48  ;;  %v1458_v58 = vadd.f32 %v1457_v53, %v1456_v49  ;;  %v1599_v52 = vrot.slane %v2592_v45, %v2624_v11 }
 0x594   :  { %v1452_v59 = vadd.f32 %v1451_v54, %v1450_v50  ;;  %v1464_v38 = vadd.f32 %v1463_v56, %v1462_v51  ;;  %v1591_v50 = vrot.slane %v2592_v45, %v2621_v10  ;;  %v1642_v56 = vrot.slane %v2594_v46, %v2621_v10 }
 0x595   :  { %v1469_v61 = vmul.f32 0.125, %v1446_v57  ;;  %v1471_v62 = vmul.f32 0.125, %v1458_v58  ;;  %v1595_v57 = vrot.slane %v2592_v45, %v2627_v13  ;;  %v1654_v10 = vrot.slane %v2594_v46, %v2630_v14 }
 0x596   :  { %v1470_v63 = vmul.f32 0.125, %v1452_v59  ;;  %v1472_v33 = vmul.f32 0.125, %v1464_v38  ;;  %v1650_v38 = vrot.slane %v2594_v46, %v2624_v11 }
 0x597   :  { %v1477_v3 = vsub.f32 %v2096_v19, %v1469_v61  ;;  %v1479_v4 = vsub.f32 %v2098_v0, %v1471_v62  ;;  %v1603_v61 = vrot.slane %v2592_v45, %v2630_v14 }
 0x598   :  { %v1478_v42 = vsub.f32 %v2097_v32, %v1470_v63  ;;  %v1480_v5 = vsub.f32 %v2099_v60, %v1472_v33 }
 0x599   :  { %v1485_v41 = vmul.f32 %v1477_v3, %v1477_v3  ;;  %v1487_v6 = vmul.f32 %v1479_v4, %v1479_v4 }
 0x59a   :  { %v1486_v39 = vmul.f32 %v1478_v42, %v1478_v42  ;;  %v1488_v7 = vmul.f32 %v1480_v5, %v1480_v5 }
 0x59b   :  { %v1513_v1 = vrot.slane %v1485_v41, 4  ;;  %v1525_v2 = vrot.slane %v1487_v6, 4 }
 0x59c   :  { %v1519_v15 = vrot.slane %v1486_v39, 4  ;;  %v1531_v44 = vrot.slane %v1488_v7, 4 }
 0x59d   :  { %v1514_v16 = vadd.f32 %v1513_v1, %v1485_v41  ;;  %v1526_v17 = vadd.f32 %v1525_v2, %v1487_v6 }
 0x59e   :  { %v1520_v55 = vadd.f32 %v1519_v15, %v1486_v39  ;;  %v1532_v18 = vadd.f32 %v1531_v44, %v1488_v7 }
 0x59f   :  { %v1515_v20 = vrot.slane %v1514_v16, 2  ;;  %v1527_v21 = vrot.slane %v1526_v17, 2 }
 0x5a0   :  { %v1521_v22 = vrot.slane %v1520_v55, 2  ;;  %v1533_v27 = vrot.slane %v1532_v18, 2 }
 0x5a1   :  { %v1516_v19 = vadd.f32 %v1515_v20, %v1514_v16  ;;  %v1528_v0 = vadd.f32 %v1527_v21, %v1526_v17 }
 0x5a2   :  { %v1522_v32 = vadd.f32 %v1521_v22, %v1520_v55  ;;  %v1534_v60 = vadd.f32 %v1533_v27, %v1532_v18 }
 0x5a3   :  { %v1517_v23 = vrot.slane %v1516_v19, 1  ;;  %v1529_v28 = vrot.slane %v1528_v0, 1 }
 0x5a4   :  { %v1523_v29 = vrot.slane %v1522_v32, 1  ;;  %v1535_v31 = vrot.slane %v1534_v60, 1 }
 0x5a5   :  { %v1518_v34 = vadd.f32 %v1517_v23, %v1516_v19  ;;  %v1530_v24 = vadd.f32 %v1529_v28, %v1528_v0 }
 0x5a6   :  { %v1524_v36 = vadd.f32 %v1523_v29, %v1522_v32  ;;  %v1536_v37 = vadd.f32 %v1535_v31, %v1534_v60 }
 0x5a7   :  { %v1541_v25 = vmul.f32 0.125, %v1518_v34  ;;  %v1543_v12 = vmul.f32 0.125, %v1530_v24 }
 0x5a8   :  { %v1542_v26 = vmul.f32 0.125, %v1524_v36  ;;  %v1544_v40 = vmul.f32 0.125, %v1536_v37 }
 0x5a9   :  { %v1549_v47 = vadd.f32 0.8, %v1541_v25  ;;  %v1551_v30 = vadd.f32 0.8, %v1543_v12 }
 0x5aa   :  { %v1550_v48 = vadd.f32 0.8, %v1542_v26  ;;  %v1552_v49 = vadd.f32 0.8, %v1544_v40 }
 0x5ab   :  { %2185 = vrsqrt.f32 %v1549_v47 }
 0x5ac   :  { %2187 = vrsqrt.f32 %v1551_v30 }
 0x5ad   :  { %2189 = vrsqrt.f32 %v1550_v48 }
 0x5ae   :  { %2191 = vrsqrt.f32 %v1552_v49 }
 0x5b5   :  { %v2186_v51 = vpop.eup %2185 }
 0x5b6   :  { %v2188_v53 = vpop.eup %2187  ;;  %v1565_v54 = vmul.f32 %v2186_v51, %v1477_v3  ;;  %v1646_v3 = vrot.slane %v2594_v46, %v2627_v13 }
 0x5b7   :  { %v2190_v58 = vpop.eup %2189  ;;  %v1567_v59 = vmul.f32 %v2188_v53, %v1479_v4 }
 0x5b8   :  { %v2192_v62 = vpop.eup %2191  ;;  %v1616_v63 = vmul.f32 %v1591_v50, %v1565_v54  ;;  %v1566_v33 = vmul.f32 %v2190_v58, %v1478_v42 }
 0x5b9   :  { %v1618_v41 = vmul.f32 %v1599_v52, %v1567_v59  ;;  %v1568_v6 = vmul.f32 %v2192_v62, %v1480_v5 }
 0x5ba   :  { %v1667_v39 = vadd.f32 %v1642_v56, %v1616_v63  ;;  %v1617_v7 = vmul.f32 %v1595_v57, %v1566_v33 }
 0x5bb   :  { %v1669_v4 = vadd.f32 %v1650_v38, %v1618_v41  ;;  %v1619_v1 = vmul.f32 %v1603_v61, %v1568_v6 }
 0x5bc   :  { %vm1675_vm13 = vcmp.gt.f32.partialorder %v1667_v39, 0.0  ;;  %v1683_v11 = vmul.f32 0.2, %v1667_v39  ;;  %v1668_v2 = vadd.f32 %v1646_v3, %v1617_v7 }
 0x5bd   :  { %vm1677_vm14 = vcmp.gt.f32.partialorder %v1669_v4, 0.0  ;;  %v1685_v45 = vmul.f32 0.2, %v1669_v4  ;;  %v1670_v15 = vadd.f32 %v1654_v10, %v1619_v1 }
 0x5be   :  { %v2656_v44 = vsel %vm1675_vm13, %v1667_v39, %v1683_v11  ;;  %vm1676_vm15 = vcmp.gt.f32.partialorder %v1668_v2, 0.0  ;;  %v1684_v42 = vmul.f32 0.2, %v1668_v2 }
 0x5bf   :  { %v2658_v13 = vsel %vm1677_vm14, %v1669_v4, %v1685_v45  ;;  %vm1678_vm0 = vcmp.gt.f32.partialorder %v1670_v15, 0.0  ;;  %v1686_v5 = vmul.f32 0.2, %v1670_v15 }
 0x5c0   :  { %v2660_v16 = vsel %vm1676_vm15, %v1668_v2, %v1684_v42 }
 0x5c1   :  { %v2662_v46 = vsel %vm1678_vm0, %v1670_v15, %v1686_v5 }
 0x5c2   :  { %2337 = dma.done.wait [#allocation5 + $0x2], 8192 }
 0x5c3   :  { %2338 = vsyncadd [#allocation5 + $0x2], 4294959104  ;;  %v1765_v14 = vpack.c.bf16 %v2616_v9, %v2616_v9  ;;  %v1767_v17 = vpack.c.bf16 %v2618_v43, %v2618_v43  ;;  %v1707_v55 = vld [vmem:[#allocation4 + $0x40] sm:$0xff]  ;;  %v1708_v22 = vld [vmem:[#allocation4 + $0x48] sm:$0xff]  ;;  %v1764_v57 = vpack.c.bf16 %v2612_v8, %v2612_v8  ;;  %v1766_v58 = vpack.c.bf16 %v2614_v35, %v2614_v35 }
 0x5c4   :  { %v1723_v18 = vld [vmem:[#allocation4 + $0xc0] sm:$0xff]  ;;  %1996 = vmatprep.subr.bf16.mxu0 %v1707_v55  ;;  %v1724_v27 = vld [vmem:[#allocation4 + $0xc8] sm:$0xff]  ;;  %v1709_v9 = vld [vmem:[#allocation4 + $0x50] sm:$0xff]  ;;  %v1769_v63 = vpack.c.bf16 %v2660_v16, %v2660_v16  ;;  %v1771_v33 = vpack.c.bf16 %v2662_v46, %v2662_v46 }
 0x5c5   :  { %1808 = vmatprep.mubr.bf16.mxu0 %v1765_v14  ;;  %1848 = vmatprep.mubr.bf16.mxu1 %v1767_v17  ;;  %v1699_v20 = vld [vmem:[#allocation4] sm:$0xff]  ;;  %v1700_v19 = vld [vmem:[#allocation4 + $0x8] sm:$0xff]  ;;  %v1725_v32 = vld [vmem:[#allocation4 + $0xd0] sm:$0xff] }
 0x5c6   :  { %2018 = vmatprep.subr.bf16.mxu1 %v1723_v18  ;;  %v1715_v21 = vld [vmem:[#allocation4 + $0x80] sm:$0xff]  ;;  %1997 = vmatpush3.bf16.msra.mxu0 %v1699_v20  ;;  %v1716_v0 = vld [vmem:[#allocation4 + $0x88] sm:$0xff]  ;;  %v1701_v43 = vld [vmem:[#allocation4 + $0x10] sm:$0xff] }
 0x5c7   :  { %2019 = vmatpush3.bf16.msra.mxu1 %v1715_v21  ;;  %1998 = vmatprep.subr.bf16.mxu0 %v1708_v22  ;;  %v1717_v60 = vld [vmem:[#allocation4 + $0x90] sm:$0xff]  ;;  %v1710_v23 = vld [vmem:[#allocation4 + $0x58] sm:$0xff]  ;;  %v1711_v34 = vld [vmem:[#allocation4 + $0x60] sm:$0xff] }
 0x5c8   :  { %2020 = vmatprep.subr.bf16.mxu1 %v1724_v27  ;;  %v1726_v28 = vld [vmem:[#allocation4 + $0xd8] sm:$0xff]  ;;  %v1727_v24 = vld [vmem:[#allocation4 + $0xe0] sm:$0xff]  ;;  %v1712_v25 = vld [vmem:[#allocation4 + $0x68] sm:$0xff] }
 0x5c9   :  { %v1702_v29 = vld [vmem:[#allocation4 + $0x18] sm:$0xff]  ;;  %v1703_v36 = vld [vmem:[#allocation4 + $0x20] sm:$0xff]  ;;  %v1728_v12 = vld [vmem:[#allocation4 + $0xe8] sm:$0xff] }
 0x5ca   :  { %1999 = vmatpush3.bf16.msra.mxu0 %v1700_v19  ;;  %v1718_v31 = vld [vmem:[#allocation4 + $0x98] sm:$0xff]  ;;  %v1719_v37 = vld [vmem:[#allocation4 + $0xa0] sm:$0xff]  ;;  %v1704_v26 = vld [vmem:[#allocation4 + $0x28] sm:$0xff]  ;;  %v1768_v19 = vpack.c.bf16 %v2656_v44, %v2656_v44 }
 0x5cb   :  { %2021 = vmatpush3.bf16.msra.mxu1 %v1716_v0  ;;  %2000 = vmatprep.subr.bf16.mxu0 %v1709_v9  ;;  %v1720_v40 = vld [vmem:[#allocation4 + $0xa8] sm:$0xff]  ;;  %v1713_v47 = vld [vmem:[#allocation4 + $0x70] sm:$0xff]  ;;  %v1714_v50 = vld [vmem:[#allocation4 + $0x78] sm:$0xff]  ;;  %v1770_v0 = vpack.c.bf16 %v2658_v13, %v2658_v13 }
 0x5cc   :  { %2022 = vmatprep.subr.bf16.mxu1 %v1725_v32  ;;  %v1729_v30 = vld [vmem:[#allocation4 + $0xf0] sm:$0xff]  ;;  %v1730_v51 = vld [vmem:[#allocation4 + $0xf8] sm:$0xff]  ;;  %v1739_v54 = vld [vmem:[#allocation4 + $0x140] sm:$0xff] }
 0x5cd   :  { %v1705_v48 = vld [vmem:[#allocation4 + $0x30] sm:$0xff]  ;;  %v1706_v52 = vld [vmem:[#allocation4 + $0x38] sm:$0xff]  ;;  %v1755_v56 = vld [vmem:[#allocation4 + $0x1c0] sm:$0xff] }
 0x5ce   :  { %2001 = vmatpush3.bf16.msra.mxu0 %v1701_v43  ;;  %v1721_v49 = vld [vmem:[#allocation4 + $0xb0] sm:$0xff]  ;;  %v1722_v53 = vld [vmem:[#allocation4 + $0xb8] sm:$0xff]  ;;  %v1731_v59 = vld [vmem:[#allocation4 + $0x100] sm:$0xff] }
 0x5cf   :  { %2023 = vmatpush3.bf16.msra.mxu1 %v1717_v60  ;;  %2002 = vmatprep.subr.bf16.mxu0 %v1710_v23  ;;  %v1747_v38 = vld [vmem:[#allocation4 + $0x180] sm:$0xff]  ;;  %v1740_v61 = vld [vmem:[#allocation4 + $0x148] sm:$0xff]  ;;  %v1741_v3 = vld [vmem:[#allocation4 + $0x150] sm:$0xff] }
 0x5d0   :  { %2024 = vmatprep.subr.bf16.mxu1 %v1726_v28  ;;  %v1756_v62 = vld [vmem:[#allocation4 + $0x1c8] sm:$0xff]  ;;  %v1757_v41 = vld [vmem:[#allocation4 + $0x1d0] sm:$0xff]  ;;  %v1742_v39 = vld [vmem:[#allocation4 + $0x158] sm:$0xff] }
 0x5d1   :  { %v1732_v8 = vld [vmem:[#allocation4 + $0x108] sm:$0xff]  ;;  %v1733_v6 = vld [vmem:[#allocation4 + $0x110] sm:$0xff]  ;;  %v1758_v7 = vld [vmem:[#allocation4 + $0x1d8] sm:$0xff] }
 0x5d2   :  { %2003 = vmatpush3.bf16.msra.mxu0 %v1702_v29  ;;  %v1748_v35 = vld [vmem:[#allocation4 + $0x188] sm:$0xff]  ;;  %v1749_v10 = vld [vmem:[#allocation4 + $0x190] sm:$0xff]  ;;  %v1734_v4 = vld [vmem:[#allocation4 + $0x118] sm:$0xff] }
 0x5d3   :  { %2025 = vmatpush3.bf16.msra.mxu1 %v1718_v31  ;;  %2004 = vmatprep.subr.bf16.mxu0 %v1711_v34  ;;  %v1750_v1 = vld [vmem:[#allocation4 + $0x198] sm:$0xff]  ;;  %v1743_v11 = vld [vmem:[#allocation4 + $0x160] sm:$0xff]  ;;  %v1744_v42 = vld [vmem:[#allocation4 + $0x168] sm:$0xff] }
 0x5d4   :  { %2026 = vmatprep.subr.bf16.mxu1 %v1727_v24  ;;  %v1759_v2 = vld [vmem:[#allocation4 + $0x1e0] sm:$0xff]  ;;  %v1760_v5 = vld [vmem:[#allocation4 + $0x1e8] sm:$0xff]  ;;  %v1745_v14 = vld [vmem:[#allocation4 + $0x170] sm:$0xff] }
 0x5d5   :  { %v1735_v45 = vld [vmem:[#allocation4 + $0x120] sm:$0xff]  ;;  %v1736_v16 = vld [vmem:[#allocation4 + $0x128] sm:$0xff]  ;;  %v1761_v17 = vld [vmem:[#allocation4 + $0x1f0] sm:$0xff] }
 0x5d6   :  { %2005 = vmatpush3.bf16.msra.mxu0 %v1703_v36  ;;  %v1751_v15 = vld [vmem:[#allocation4 + $0x1a0] sm:$0xff]  ;;  %v1752_v46 = vld [vmem:[#allocation4 + $0x1a8] sm:$0xff]  ;;  %v1737_v55 = vld [vmem:[#allocation4 + $0x130] sm:$0xff] }
 0x5d7   :  { %2027 = vmatpush3.bf16.msra.mxu1 %v1719_v37  ;;  %2006 = vmatprep.subr.bf16.mxu0 %v1712_v25  ;;  %v1753_v18 = vld [vmem:[#allocation4 + $0x1b0] sm:$0xff]  ;;  %v1746_v20 = vld [vmem:[#allocation4 + $0x178] sm:$0xff] }
 0x5d8   :  { %2028 = vmatprep.subr.bf16.mxu1 %v1728_v12  ;;  %v1762_v21 = vld [vmem:[#allocation4 + $0x1f8] sm:$0xff]  ;;  %v1989_v43 = vld [vmem:[%s2688_s2 + $0x1] ss:$0 sm:$0xff] }
 0x5d9   :  { %v1738_v22 = vld [vmem:[#allocation4 + $0x138] sm:$0xff] }
 0x5da   :  { %2007 = vmatpush3.bf16.msra.mxu0 %v1704_v26  ;;  %v1754_v27 = vld [vmem:[#allocation4 + $0x1b8] sm:$0xff] }
 0x5db   :  { %2029 = vmatpush3.bf16.msra.mxu1 %v1720_v40  ;;  %2008 = vmatprep.subr.bf16.mxu0 %v1713_v47 }
 0x5dc   :  { %2030 = vmatprep.subr.bf16.mxu1 %v1729_v30 }
 0x5de   :  { %2009 = vmatpush3.bf16.msra.mxu0 %v1705_v48 }
 0x5df   :  { %2031 = vmatpush3.bf16.msra.mxu1 %v1721_v49  ;;  %2010 = vmatprep.subr.bf16.mxu0 %v1714_v50 }
 0x5e0   :  { %2032 = vmatprep.subr.bf16.mxu1 %v1730_v51 }
 0x5e2   :  { %2011 = vmatpush3.bf16.msra.mxu0 %v1706_v52 }
 0x5e3   :  { %2033 = vmatpush3.bf16.msra.mxu1 %v1722_v53  ;;  %2040 = vmatprep.subr.bf16.mxu0 %v1739_v54 }
 0x5e4   :  { %2062 = vmatprep.subr.bf16.mxu1 %v1755_v56 }
 0x5e5   :  { %1809 = vmatmul.mubr.bf16.vlgmr.msra.gmra.mrb[16].mxu0 %v1764_v57 }
 0x5e6   :  { %1849 = vmatmul.mubr.bf16.vlgmr.msra.gmra.mrb[16].mxu1 %v1766_v58  ;;  %2041 = vmatpush3.bf16.msra.mxu0 %v1731_v59 }
 0x5e7   :  { %2063 = vmatpush3.bf16.msra.mxu1 %v1747_v38  ;;  %2042 = vmatprep.subr.bf16.mxu0 %v1740_v61 }
 0x5e8   :  { %2064 = vmatprep.subr.bf16.mxu1 %v1756_v62  ;;  %1888 = vmatprep.mubr.bf16.mxu0 %v1769_v63 }
 0x5e9   :  { %1928 = vmatprep.mubr.bf16.mxu1 %v1771_v33 }
 0x5ea   :  { %2043 = vmatpush3.bf16.msra.mxu0 %v1732_v8 }
 0x5eb   :  { %2065 = vmatpush3.bf16.msra.mxu1 %v1748_v35  ;;  %2044 = vmatprep.subr.bf16.mxu0 %v1741_v3 }
 0x5ec   :  { %2066 = vmatprep.subr.bf16.mxu1 %v1757_v41 }
 0x5ee   :  { %2045 = vmatpush3.bf16.msra.mxu0 %v1733_v6 }
 0x5ef   :  { %2067 = vmatpush3.bf16.msra.mxu1 %v1749_v10  ;;  %2046 = vmatprep.subr.bf16.mxu0 %v1742_v39 }
 0x5f0   :  { %2068 = vmatprep.subr.bf16.mxu1 %v1758_v7 }
 0x5f2   :  { %2047 = vmatpush3.bf16.msra.mxu0 %v1734_v4 }
 0x5f3   :  { %2069 = vmatpush3.bf16.msra.mxu1 %v1750_v1  ;;  %2048 = vmatprep.subr.bf16.mxu0 %v1743_v11 }
 0x5f4   :  { %2070 = vmatprep.subr.bf16.mxu1 %v1759_v2 }
 0x5f6   :  { %2049 = vmatpush3.bf16.msra.mxu0 %v1735_v45 }
 0x5f7   :  { %2071 = vmatpush3.bf16.msra.mxu1 %v1751_v15  ;;  %2050 = vmatprep.subr.bf16.mxu0 %v1744_v42 }
 0x5f8   :  { %2072 = vmatprep.subr.bf16.mxu1 %v1760_v5 }
 0x5fa   :  { %2051 = vmatpush3.bf16.msra.mxu0 %v1736_v16 }
 0x5fb   :  { %2073 = vmatpush3.bf16.msra.mxu1 %v1752_v46  ;;  %2052 = vmatprep.subr.bf16.mxu0 %v1745_v14 }
 0x5fc   :  { %2074 = vmatprep.subr.bf16.mxu1 %v1761_v17 }
 0x5fe   :  { %2053 = vmatpush3.bf16.msra.mxu0 %v1737_v55 }
 0x5ff   :  { %2075 = vmatpush3.bf16.msra.mxu1 %v1753_v18  ;;  %2054 = vmatprep.subr.bf16.mxu0 %v1746_v20 }
 0x600   :  { %2076 = vmatprep.subr.bf16.mxu1 %v1762_v21 }
 0x602   :  { %2055 = vmatpush3.bf16.msra.mxu0 %v1738_v22 }
 0x603   :  { %2077 = vmatpush3.bf16.msra.mxu1 %v1754_v27 }
 0x605   :  { %1889 = vmatmul.mubr.bf16.vlgmr.msra.gmra.mrb[20].mxu0 %v1768_v19 }
 0x606   :  { %1929 = vmatmul.mubr.bf16.vlgmr.msra.gmra.mrb[20].mxu1 %v1770_v0 }
 0x6b8   :  { %v2012_v9 = vpop.f32.mrb[16].mxu0 }
 0x6b9   :  { %v2034_v32 = vpop.f32.mrb[16].mxu1  ;;  %v2013_v60 = vpop.f32.mrb[17].mxu0 }
 0x6ba   :  { %v2035_v23 = vpop.f32.mrb[17].mxu1  ;;  %v2014_v28 = vadd.f32 %v2013_v60, %v2012_v9  ;;  %v2015_v31 = vpop.f32.mrb[18].mxu0 }
 0x6bb   :  { %v2036_v29 = vadd.f32 %v2035_v23, %v2034_v32  ;;  %v2037_v34 = vpop.f32.mrb[18].mxu1  ;;  %v2016_v44 = vpop.f32.mrb[19].mxu0 }
 0x6bc   :  { %v2038_v24 = vpop.f32.mrb[19].mxu1  ;;  %v1811_v36 = vadd.f32 %v2014_v28, %v1989_v43 }
 0x6be   :  { %v1851_v13 = vadd.f32 %v2036_v29, %v1811_v36 }
 0x6d8   :  { %v2056_v37 = vpop.f32.mrb[20].mxu0 }
 0x6d9   :  { %v2078_v25 = vpop.f32.mrb[20].mxu1  ;;  %v2057_v12 = vpop.f32.mrb[21].mxu0 }
 0x6da   :  { %v2079_v26 = vpop.f32.mrb[21].mxu1  ;;  %v2058_v40 = vadd.f32 %v2057_v12, %v2056_v37  ;;  %v2059_v30 = vpop.f32.mrb[22].mxu0 }
 0x6db   :  { %v2080_v47 = vadd.f32 %v2079_v26, %v2078_v25  ;;  %v2081_v48 = vpop.f32.mrb[22].mxu1  ;;  %v2060_v49 = vpop.f32.mrb[23].mxu0 }
 0x6dc   :  { %v2082_v50 = vpop.f32.mrb[23].mxu1  ;;  %v1891_v51 = vadd.f32 %v2058_v40, %v1851_v13 }
 0x6de   :  { %v1931_v52 = vadd.f32 %v2080_v47, %v1891_v51 }
 0x6e0   :  { %2193 = vtanh.f32 %v1931_v52 }
 0x6ea   :  { %v2194_v53 = vpop.eup %2193 }
 0x6eb   :  { %1937 = vst [vmem:[%s2696_s10] sm:$0xff] %v2194_v53 }
 0x6ec   :  { %1942 = vsyncpa [#allocation7], 1 }
 0x6ed   :  { %1943 = vsyncpa [#allocation9], 1 }
 0x6ee   :  { %1944 = vsyncpa [#allocation12], 1 }
 0x6ef   :  { %1945 = vsyncmov [#allocation5] }
 0x6f2   :  { %s1946_s25 = vpop.sfrf %1945 }
 0x6f3   :  { %p1990_p6 = scmp.ne.s32.totalorder %s1946_s25, 0 }
 0x6f5   :  { %1950 = shalt.err (%p1990_p6)  }
 0x6f6   :  { %1952 = vsyncmov [#allocation5 + $0x1] }
 0x6f9   :  { %s1953_s26 = vpop.sfrf %1952 }
 0x6fa   :  { %p1991_p7 = scmp.ne.s32.totalorder %s1953_s26, 0 }
 0x6fc   :  { %1957 = shalt.err (%p1991_p7)  }
 0x6fd   :  { %1959 = vsyncmov [#allocation5 + $0x2] }
 0x700   :  { %s1960_s27 = vpop.sfrf %1959 }
 0x701   :  { %p1992_p8 = scmp.ne.s32.totalorder %s1960_s27, 0 }
 0x703   :  { %1964 = shalt.err (%p1992_p8)  }

</bundles_post_ra>
